<compile_context>
chip_gen: v6e
topology: v6e:2x2x1
jax: 0.10.0
libtpu: 0.0.40
codegen_flags: <defaults>
</compile_context>

<pallas_src>
import functools

import jax
import jax.numpy as jnp
from jax.experimental import pallas as pl
from jax.experimental.pallas import tpu as pltpu


_VMEM = pl.BlockSpec(memory_space=pltpu.MemorySpace.VMEM)

# Static architecture constants (NOT traced): (kernel, stride, padding) per
# ConvTranspose2d layer, exactly as in the PyTorch module.
DECONV_SPECS = ((3, 1, 1), (3, 2, 1), (3, 2, 1), (4, 1, 0))


# ----------------------------- Pallas kernels ------------------------------

def _linear_lrelu_kernel(x_ref, w_ref, b_ref, o_ref):
    # x: (B, z+emb) already concatenated; w: (z+emb, C0*49); out lane-dense.
    y = jnp.dot(x_ref[...], w_ref[...], preferred_element_type=jnp.float32)
    y = y + b_ref[...]
    o_ref[...] = jnp.where(y > 0, y, 0.2 * y)            # LeakyReLU(0.2)


def _convmm_bn_lrelu_kernel(p_ref, w_ref, g_ref, b_ref, o_ref):
    # p: (K, M) im2col patches with M = B*Ho*Wo on lanes; w: (Cout, K).
    # Matmul -> per-channel batch stats over the lane axis (training-mode BN;
    # columns are exactly B*Ho*Wo, no padded cols) -> scale/shift -> LeakyReLU.
    y = jnp.dot(w_ref[...], p_ref[...], preferred_element_type=jnp.float32)
    mean = jnp.mean(y, axis=1, keepdims=True)
    var = jnp.mean(jnp.square(y - mean), axis=1, keepdims=True)
    yn = (y - mean) * jax.lax.rsqrt(var + 1e-5)
    yn = yn * g_ref[...] + b_ref[...]
    o_ref[...] = jnp.where(yn > 0, yn, 0.2 * yn)         # LeakyReLU(0.2)


def _convmm_tanh_kernel(p_ref, w_ref, o_ref):
    # p: (K, M); w: (Cout, K); out (Cout, M) lane-dense even for Cout == 1.
    y = jnp.dot(w_ref[...], p_ref[...], preferred_element_type=jnp.float32)
    o_ref[...] = jnp.tanh(y)


# ------------------------------ Pallas wrappers -----------------------------

def _cost(m, k, n, transcendentals=0):
    return pl.CostEstimate(flops=2 * m * k * n,
                           transcendentals=transcendentals,
                           bytes_accessed=4 * (m * k + k * n + m * n))


def linear_lrelu(x, w, b):
    M, K = x.shape
    N = w.shape[1]
    return pl.pallas_call(
        _linear_lrelu_kernel,
        out_shape=jax.ShapeDtypeStruct((M, N), jnp.float32),
        in_specs=[_VMEM] * 3,
        out_specs=_VMEM,
        cost_estimate=_cost(M, K, N),
    )(x, w, b)


def convmm_bn_lrelu(patches, w_mat, gamma, beta):
    K, M = patches.shape
    Cout = w_mat.shape[0]
    return pl.pallas_call(
        _convmm_bn_lrelu_kernel,
        out_shape=jax.ShapeDtypeStruct((Cout, M), jnp.float32),
        in_specs=[_VMEM] * 4,
        out_specs=_VMEM,
        cost_estimate=_cost(Cout, K, M, transcendentals=Cout),   # rsqrt per ch
    )(patches, w_mat, gamma, beta)


def convmm_tanh(patches, w_mat):
    K, M = patches.shape
    Cout = w_mat.shape[0]
    return pl.pallas_call(
        _convmm_tanh_kernel,
        out_shape=jax.ShapeDtypeStruct((Cout, M), jnp.float32),
        in_specs=[_VMEM] * 2,
        out_specs=_VMEM,
        cost_estimate=_cost(Cout, K, M, transcendentals=Cout * M),
    )(patches, w_mat)


# ------------------- ConvTranspose2d spatial glue (XLA side) ----------------

def _convT_patches_cfirst(x, kh, kw, stride, padding):
    """x: (Cin, B, H, W) channel-first.  Zero-dilate by `stride` (static int),
    pad by (k-1-padding), extract im2col patches.
    Returns (patches (kh*kw*Cin, B*Ho*Wo), Ho, Wo); patch row order is
    (i, j, cin) with the row tap i outermost; columns are (b, ho, wo)."""
    Cin, B, H, W = x.shape
    ph, pw = kh - 1 - padding, kw - 1 - padding
    s = stride
    if s > 1:
        Hd, Wd = (H - 1) * s + 1, (W - 1) * s + 1
        xp = jnp.zeros((Cin, B, Hd + 2 * ph, Wd + 2 * pw), x.dtype)
        xp = xp.at[:, :, ph:ph + Hd:s, pw:pw + Wd:s].set(x)
    else:
        Hd, Wd = H, W
        xp = jnp.pad(x, ((0, 0), (0, 0), (ph, ph), (pw, pw)))
    Ho = Hd + 2 * ph - kh + 1
    Wo = Wd + 2 * pw - kw + 1
    taps = [xp[:, :, i:i + Ho, j:j + Wo] for i in range(kh) for j in range(kw)]
    patches = jnp.stack(taps, axis=0).reshape(kh * kw * Cin, B * Ho * Wo)
    return patches, Ho, Wo


def _convT_weight_matrix(w):
    """PyTorch ConvTranspose2d weight (Cin, Cout, kh, kw) -> forward-conv
    matmul weight (Cout, kh*kw*Cin): spatial flip, channel roles swapped,
    column order (i, j, cin) matching _convT_patches_cfirst."""
    Cin, Cout, kh, kw = w.shape
    w_flip = jnp.flip(w, axis=(2, 3))                     # (Cin, Cout, kh, kw)
    return w_flip.transpose(1, 2, 3, 0).reshape(Cout, kh * kw * Cin)


# ------------------------------ Generator model -----------------------------

def init_params(key, z_size, class_num, class_emb, gc):
    """Raw parameters in PyTorch-equivalent layouts (Linear weight stored as
    (in_features, out_features) i.e. already transposed for x @ W,
    ConvT weights (Cin, Cout, kh, kw))."""
    ks = jax.random.split(key, 16)
    params = {}
    params["emb"] = 0.1 * jax.random.normal(ks[0], (class_num, class_emb),
                                            jnp.float32)
    d_in = z_size + class_emb
    params["w_in"] = jax.random.normal(ks[1], (d_in, gc[0] * 7 * 7),
                                       jnp.float32) / jnp.sqrt(float(d_in))
    params["b_in"] = 0.01 * jax.random.normal(ks[2], (gc[0] * 7 * 7,),
                                              jnp.float32)
    deconv = []
    for i, (k, _, _) in enumerate(DECONV_SPECS):
        cin, cout = gc[i], gc[i + 1]
        w = jax.random.normal(ks[3 + 3 * i], (cin, cout, k, k),
                              jnp.float32) / jnp.sqrt(float(cin * k * k))
        layer = {"w": w}
        if i < 3:
            layer["gamma"] = 1.0 + 0.1 * jax.random.normal(
                ks[4 + 3 * i], (cout,), jnp.float32)
            layer["beta"] = 0.1 * jax.random.normal(
                ks[5 + 3 * i], (cout,), jnp.float32)
        deconv.append(layer)
    params["deconv"] = deconv
    return params


def prepare_params(params):
    """One-time (outside jit) relayout of weights into matmul-ready form so no
    flips/transposes/reshapes are re-executed per forward step."""
    prepped = {
        "emb": params["emb"],
        "w_in": params["w_in"],                       # (z+emb, C0*49): columns
        "b_in": params["b_in"].reshape(1, -1),        # already in (c,h,w) order
        "deconv": [],
    }
    for i, layer in enumerate(params["deconv"]):
        d = {"w_mat": _convT_weight_matrix(layer["w"])}    # (Cout, kh*kw*Cin)
        if "gamma" in layer:
            d["gamma"] = layer["gamma"].reshape(-1, 1)     # (Cout, 1)
            d["beta"] = layer["beta"].reshape(-1, 1)
        prepped["deconv"].append(d)
    return prepped


def generator_forward(params, z, label, img_size_x, img_size_y):
    B = z.shape[0]
    z = z.astype(jnp.float32)
    C0 = params["w_in"].shape[1] // 49

    # Embedding lookup + concat (tiny gather/concat, stays in XLA).
    condn = params["emb"][label]                          # (B, class_emb)
    x_in = jnp.concatenate([z, condn], axis=1)            # (B, z+emb)

    # Fused Linear + bias + LeakyReLU; output (B, C0*49) is lane-dense.
    y = linear_lrelu(x_in, params["w_in"], params["b_in"])
    # To channel-first activations (C0, B, 7, 7) for the conv stack (tiny op).
    x = y.reshape(B, C0, 7, 7).transpose(1, 0, 2, 3)

    # Deconv stack: (ConvTranspose -> BN -> LeakyReLU) x3, each fused into one
    # Pallas kernel (matmul + batch-stat BN + LeakyReLU), lane-dense outputs.
    for li in range(3):
        k, s, p = DECONV_SPECS[li]
        layer = params["deconv"][li]
        patches, Ho, Wo = _convT_patches_cfirst(x, k, k, s, p)
        yc = convmm_bn_lrelu(patches, layer["w_mat"],
                             layer["gamma"], layer["beta"])   # (Cout, B*Ho*Wo)
        x = yc.reshape(layer["w_mat"].shape[0], B, Ho, Wo)

    # Final ConvTranspose (k=4, s=1, p=0) + Tanh, fused; output (1, B*28*28).
    k, s, p = DECONV_SPECS[3]
    layer = params["deconv"][3]
    patches, Ho, Wo = _convT_patches_cfirst(x, k, k, s, p)
    yc = convmm_tanh(patches, layer["w_mat"])

    # Single channel-first -> NCHW conversion at the very end (C_out = 1).
    out = yc.reshape(layer["w_mat"].shape[0], B, Ho, Wo).transpose(1, 0, 2, 3)
    return out[:, :, :img_size_x, :img_size_y]


# ------------------------------------ main -----------------------------------

if __name__ == "__main__":
    # MNIST-shaped config (spatial pipeline 7 -> 7 -> 13 -> 25 -> 28 is fixed
    # by the architecture); small channels / batch.
    z_size, class_num, class_emb = 16, 10, 8
    img_size_x = img_size_y = 28
    generator_channels = [32, 16, 8, 8, 1]
    B = 2

    key = jax.random.PRNGKey(0)
    kp, kz, kl = jax.random.split(key, 3)
    raw_params = init_params(kp, z_size, class_num, class_emb,
                             generator_channels)
    params = prepare_params(raw_params)      # weight relayout once, outside jit
    z = jax.random.normal(kz, (B, z_size), jnp.float32)
    label = jax.random.randint(kl, (B,), 0, class_num)

    fwd = jax.jit(functools.partial(generator_forward,
                                    img_size_x=img_size_x,
                                    img_size_y=img_size_y))
    out = jax.block_until_ready(fwd(params, z, label))

    assert out.shape == (B, generator_channels[4], img_size_x, img_size_y), out.shape
    assert bool(jnp.all(jnp.isfinite(out)))
    print("KERNEL_OK")
</pallas_src>

<mosaic_0001>
module attributes {stable_mosaic.version = 11 : i64} {
  func.func @_linear_lrelu_kernel(%arg0: memref<2x24xf32, #tpu.memory_space<vmem>>, %arg1: memref<24x1568xf32, #tpu.memory_space<vmem>>, %arg2: memref<1x1568xf32, #tpu.memory_space<vmem>>, %arg3: memref<2x1568xf32, #tpu.memory_space<vmem>>) attributes {dimension_semantics = [], scalar_prefetch = 0 : i64, scratch_operands = 0 : i64, tpu.core_type = #tpu.core_type<tc>} {
    %c0 = arith.constant 0 : index
    %c0_0 = arith.constant 0 : index
    %0 = vector.load %arg0[%c0, %c0_0] : memref<2x24xf32, #tpu.memory_space<vmem>>, vector<2x24xf32>
    %c0_1 = arith.constant 0 : index
    %c0_2 = arith.constant 0 : index
    %1 = vector.load %arg1[%c0_1, %c0_2] : memref<24x1568xf32, #tpu.memory_space<vmem>>, vector<24x1568xf32>
    %cst = arith.constant dense<0.000000e+00> : vector<2x1568xf32>
    %2 = tpu.matmul %0, %1, %cst {dimension_numbers = #tpu.dot_dimension_numbers<[1], [0], [0], [1], [0, 0, 1, 1], [], []>} : vector<2x24xf32>, vector<24x1568xf32>, vector<2x1568xf32> -> vector<2x1568xf32>
    %c0_3 = arith.constant 0 : index
    %c0_4 = arith.constant 0 : index
    %3 = vector.load %arg2[%c0_3, %c0_4] : memref<1x1568xf32, #tpu.memory_space<vmem>>, vector<1x1568xf32>
    %4 = vector.broadcast %3 : vector<1x1568xf32> to vector<2x1568xf32>
    %5 = arith.addf %2, %4 : vector<2x1568xf32>
    %cst_5 = arith.constant 0.000000e+00 : f32
    %6 = vector.broadcast %cst_5 : f32 to vector<2x1568xf32>
    %7 = arith.cmpf ogt, %5, %6 : vector<2x1568xf32>
    %cst_6 = arith.constant 2.000000e-01 : f32
    %8 = vector.broadcast %cst_6 : f32 to vector<2x1568xf32>
    %9 = arith.mulf %8, %5 : vector<2x1568xf32>
    %10 = arith.select %7, %5, %9 : vector<2x1568xi1>, vector<2x1568xf32>
    %c0_7 = arith.constant 0 : index
    %c0_8 = arith.constant 0 : index
    %11 = vector.load %arg3[%c0_7, %c0_8] : memref<2x1568xf32, #tpu.memory_space<vmem>>, vector<2x1568xf32>
    tpu.vector_store %arg3[%c0_7, %c0_8], %10 {strides = array<i32>} : memref<2x1568xf32, #tpu.memory_space<vmem>>, vector<2x1568xf32>,
    return
  }
}

module attributes {stable_mosaic.version = 11 : i64} {
  func.func @_convmm_bn_lrelu_kernel(%arg0: memref<288x98xf32, #tpu.memory_space<vmem>>, %arg1: memref<16x288xf32, #tpu.memory_space<vmem>>, %arg2: memref<16x1xf32, #tpu.memory_space<vmem>>, %arg3: memref<16x1xf32, #tpu.memory_space<vmem>>, %arg4: memref<16x98xf32, #tpu.memory_space<vmem>>) attributes {dimension_semantics = [], scalar_prefetch = 0 : i64, scratch_operands = 0 : i64, tpu.core_type = #tpu.core_type<tc>} {
    %c0 = arith.constant 0 : index
    %c0_0 = arith.constant 0 : index
    %0 = vector.load %arg1[%c0, %c0_0] : memref<16x288xf32, #tpu.memory_space<vmem>>, vector<16x288xf32>
    %c0_1 = arith.constant 0 : index
    %c0_2 = arith.constant 0 : index
    %1 = vector.load %arg0[%c0_1, %c0_2] : memref<288x98xf32, #tpu.memory_space<vmem>>, vector<288x98xf32>
    %cst = arith.constant dense<0.000000e+00> : vector<16x98xf32>
    %2 = tpu.matmul %0, %1, %cst {dimension_numbers = #tpu.dot_dimension_numbers<[1], [0], [0], [1], [0, 0, 1, 1], [], []>} : vector<16x288xf32>, vector<288x98xf32>, vector<16x98xf32> -> vector<16x98xf32>
    %cst_3 = arith.constant dense<0.000000e+00> : vector<16xf32>
    %3 = vector.multi_reduction <add>, %2, %cst_3 [1] : vector<16x98xf32> to vector<16xf32>
    %4 = vector.shape_cast %3 : vector<16xf32> to vector<16x1xf32>
    %cst_4 = arith.constant 9.800000e+01 : f32
    %5 = vector.broadcast %cst_4 : f32 to vector<16x1xf32>
    %6 = arith.divf %4, %5 : vector<16x1xf32>
    %7 = vector.broadcast %6 : vector<16x1xf32> to vector<16x98xf32>
    %8 = arith.subf %2, %7 : vector<16x98xf32>
    %9 = arith.mulf %8, %8 : vector<16x98xf32>
    %cst_5 = arith.constant dense<0.000000e+00> : vector<16xf32>
    %10 = vector.multi_reduction <add>, %9, %cst_5 [1] : vector<16x98xf32> to vector<16xf32>
    %11 = vector.shape_cast %10 : vector<16xf32> to vector<16x1xf32>
    %cst_6 = arith.constant 9.800000e+01 : f32
    %12 = vector.broadcast %cst_6 : f32 to vector<16x1xf32>
    %13 = arith.divf %11, %12 : vector<16x1xf32>
    %14 = vector.broadcast %6 : vector<16x1xf32> to vector<16x98xf32>
    %15 = arith.subf %2, %14 : vector<16x98xf32>
    %cst_7 = arith.constant 9.99999974E-6 : f32
    %16 = vector.broadcast %cst_7 : f32 to vector<16x1xf32>
    %17 = arith.addf %13, %16 : vector<16x1xf32>
    %18 = math.rsqrt %17 : vector<16x1xf32>
    %19 = vector.broadcast %18 : vector<16x1xf32> to vector<16x98xf32>
    %20 = arith.mulf %15, %19 : vector<16x98xf32>
    %c0_8 = arith.constant 0 : index
    %c0_9 = arith.constant 0 : index
    %21 = vector.load %arg2[%c0_8, %c0_9] : memref<16x1xf32, #tpu.memory_space<vmem>>, vector<16x1xf32>
    %22 = vector.broadcast %21 : vector<16x1xf32> to vector<16x98xf32>
    %23 = arith.mulf %20, %22 : vector<16x98xf32>
    %c0_10 = arith.constant 0 : index
    %c0_11 = arith.constant 0 : index
    %24 = vector.load %arg3[%c0_10, %c0_11] : memref<16x1xf32, #tpu.memory_space<vmem>>, vector<16x1xf32>
    %25 = vector.broadcast %24 : vector<16x1xf32> to vector<16x98xf32>
    %26 = arith.addf %23, %25 : vector<16x98xf32>
    %cst_12 = arith.constant 0.000000e+00 : f32
    %27 = vector.broadcast %cst_12 : f32 to vector<16x98xf32>
    %28 = arith.cmpf ogt, %26, %27 : vector<16x98xf32>
    %cst_13 = arith.constant 2.000000e-01 : f32
    %29 = vector.broadcast %cst_13 : f32 to vector<16x98xf32>
    %30 = arith.mulf %29, %26 : vector<16x98xf32>
    %31 = arith.select %28, %26, %30 : vector<16x98xi1>, vector<16x98xf32>
    %c0_14 = arith.constant 0 : index
    %c0_15 = arith.constant 0 : index
    %32 = vector.load %arg4[%c0_14, %c0_15] : memref<16x98xf32, #tpu.memory_space<vmem>>, vector<16x98xf32>
    tpu.vector_store %arg4[%c0_14, %c0_15], %31 {strides = array<i32>} : memref<16x98xf32, #tpu.memory_space<vmem>>, vector<16x98xf32>,
    return
  }
}

module attributes {stable_mosaic.version = 11 : i64} {
  func.func @_convmm_bn_lrelu_kernel(%arg0: memref<144x338xf32, #tpu.memory_space<vmem>>, %arg1: memref<8x144xf32, #tpu.memory_space<vmem>>, %arg2: memref<8x1xf32, #tpu.memory_space<vmem>>, %arg3: memref<8x1xf32, #tpu.memory_space<vmem>>, %arg4: memref<8x338xf32, #tpu.memory_space<vmem>>) attributes {dimension_semantics = [], scalar_prefetch = 0 : i64, scratch_operands = 0 : i64, tpu.core_type = #tpu.core_type<tc>} {
    %c0 = arith.constant 0 : index
    %c0_0 = arith.constant 0 : index
    %0 = vector.load %arg1[%c0, %c0_0] : memref<8x144xf32, #tpu.memory_space<vmem>>, vector<8x144xf32>
    %c0_1 = arith.constant 0 : index
    %c0_2 = arith.constant 0 : index
    %1 = vector.load %arg0[%c0_1, %c0_2] : memref<144x338xf32, #tpu.memory_space<vmem>>, vector<144x338xf32>
    %cst = arith.constant dense<0.000000e+00> : vector<8x338xf32>
    %2 = tpu.matmul %0, %1, %cst {dimension_numbers = #tpu.dot_dimension_numbers<[1], [0], [0], [1], [0, 0, 1, 1], [], []>} : vector<8x144xf32>, vector<144x338xf32>, vector<8x338xf32> -> vector<8x338xf32>
    %cst_3 = arith.constant dense<0.000000e+00> : vector<8xf32>
    %3 = vector.multi_reduction <add>, %2, %cst_3 [1] : vector<8x338xf32> to vector<8xf32>
    %4 = vector.shape_cast %3 : vector<8xf32> to vector<8x1xf32>
    %cst_4 = arith.constant 3.380000e+02 : f32
    %5 = vector.broadcast %cst_4 : f32 to vector<8x1xf32>
    %6 = arith.divf %4, %5 : vector<8x1xf32>
    %7 = vector.broadcast %6 : vector<8x1xf32> to vector<8x338xf32>
    %8 = arith.subf %2, %7 : vector<8x338xf32>
    %9 = arith.mulf %8, %8 : vector<8x338xf32>
    %cst_5 = arith.constant dense<0.000000e+00> : vector<8xf32>
    %10 = vector.multi_reduction <add>, %9, %cst_5 [1] : vector<8x338xf32> to vector<8xf32>
    %11 = vector.shape_cast %10 : vector<8xf32> to vector<8x1xf32>
    %cst_6 = arith.constant 3.380000e+02 : f32
    %12 = vector.broadcast %cst_6 : f32 to vector<8x1xf32>
    %13 = arith.divf %11, %12 : vector<8x1xf32>
    %14 = vector.broadcast %6 : vector<8x1xf32> to vector<8x338xf32>
    %15 = arith.subf %2, %14 : vector<8x338xf32>
    %cst_7 = arith.constant 9.99999974E-6 : f32
    %16 = vector.broadcast %cst_7 : f32 to vector<8x1xf32>
    %17 = arith.addf %13, %16 : vector<8x1xf32>
    %18 = math.rsqrt %17 : vector<8x1xf32>
    %19 = vector.broadcast %18 : vector<8x1xf32> to vector<8x338xf32>
    %20 = arith.mulf %15, %19 : vector<8x338xf32>
    %c0_8 = arith.constant 0 : index
    %c0_9 = arith.constant 0 : index
    %21 = vector.load %arg2[%c0_8, %c0_9] : memref<8x1xf32, #tpu.memory_space<vmem>>, vector<8x1xf32>
    %22 = vector.broadcast %21 : vector<8x1xf32> to vector<8x338xf32>
    %23 = arith.mulf %20, %22 : vector<8x338xf32>
    %c0_10 = arith.constant 0 : index
    %c0_11 = arith.constant 0 : index
    %24 = vector.load %arg3[%c0_10, %c0_11] : memref<8x1xf32, #tpu.memory_space<vmem>>, vector<8x1xf32>
    %25 = vector.broadcast %24 : vector<8x1xf32> to vector<8x338xf32>
    %26 = arith.addf %23, %25 : vector<8x338xf32>
    %cst_12 = arith.constant 0.000000e+00 : f32
    %27 = vector.broadcast %cst_12 : f32 to vector<8x338xf32>
    %28 = arith.cmpf ogt, %26, %27 : vector<8x338xf32>
    %cst_13 = arith.constant 2.000000e-01 : f32
    %29 = vector.broadcast %cst_13 : f32 to vector<8x338xf32>
    %30 = arith.mulf %29, %26 : vector<8x338xf32>
    %31 = arith.select %28, %26, %30 : vector<8x338xi1>, vector<8x338xf32>
    %c0_14 = arith.constant 0 : index
    %c0_15 = arith.constant 0 : index
    %32 = vector.load %arg4[%c0_14, %c0_15] : memref<8x338xf32, #tpu.memory_space<vmem>>, vector<8x338xf32>
    tpu.vector_store %arg4[%c0_14, %c0_15], %31 {strides = array<i32>} : memref<8x338xf32, #tpu.memory_space<vmem>>, vector<8x338xf32>,
    return
  }
}

module attributes {stable_mosaic.version = 11 : i64} {
  func.func @_convmm_bn_lrelu_kernel(%arg0: memref<72x1250xf32, #tpu.memory_space<vmem>>, %arg1: memref<8x72xf32, #tpu.memory_space<vmem>>, %arg2: memref<8x1xf32, #tpu.memory_space<vmem>>, %arg3: memref<8x1xf32, #tpu.memory_space<vmem>>, %arg4: memref<8x1250xf32, #tpu.memory_space<vmem>>) attributes {dimension_semantics = [], scalar_prefetch = 0 : i64, scratch_operands = 0 : i64, tpu.core_type = #tpu.core_type<tc>} {
    %c0 = arith.constant 0 : index
    %c0_0 = arith.constant 0 : index
    %0 = vector.load %arg1[%c0, %c0_0] : memref<8x72xf32, #tpu.memory_space<vmem>>, vector<8x72xf32>
    %c0_1 = arith.constant 0 : index
    %c0_2 = arith.constant 0 : index
    %1 = vector.load %arg0[%c0_1, %c0_2] : memref<72x1250xf32, #tpu.memory_space<vmem>>, vector<72x1250xf32>
    %cst = arith.constant dense<0.000000e+00> : vector<8x1250xf32>
    %2 = tpu.matmul %0, %1, %cst {dimension_numbers = #tpu.dot_dimension_numbers<[1], [0], [0], [1], [0, 0, 1, 1], [], []>} : vector<8x72xf32>, vector<72x1250xf32>, vector<8x1250xf32> -> vector<8x1250xf32>
    %cst_3 = arith.constant dense<0.000000e+00> : vector<8xf32>
    %3 = vector.multi_reduction <add>, %2, %cst_3 [1] : vector<8x1250xf32> to vector<8xf32>
    %4 = vector.shape_cast %3 : vector<8xf32> to vector<8x1xf32>
    %cst_4 = arith.constant 1.250000e+03 : f32
    %5 = vector.broadcast %cst_4 : f32 to vector<8x1xf32>
    %6 = arith.divf %4, %5 : vector<8x1xf32>
    %7 = vector.broadcast %6 : vector<8x1xf32> to vector<8x1250xf32>
    %8 = arith.subf %2, %7 : vector<8x1250xf32>
    %9 = arith.mulf %8, %8 : vector<8x1250xf32>
    %cst_5 = arith.constant dense<0.000000e+00> : vector<8xf32>
    %10 = vector.multi_reduction <add>, %9, %cst_5 [1] : vector<8x1250xf32> to vector<8xf32>
    %11 = vector.shape_cast %10 : vector<8xf32> to vector<8x1xf32>
    %cst_6 = arith.constant 1.250000e+03 : f32
    %12 = vector.broadcast %cst_6 : f32 to vector<8x1xf32>
    %13 = arith.divf %11, %12 : vector<8x1xf32>
    %14 = vector.broadcast %6 : vector<8x1xf32> to vector<8x1250xf32>
    %15 = arith.subf %2, %14 : vector<8x1250xf32>
    %cst_7 = arith.constant 9.99999974E-6 : f32
    %16 = vector.broadcast %cst_7 : f32 to vector<8x1xf32>
    %17 = arith.addf %13, %16 : vector<8x1xf32>
    %18 = math.rsqrt %17 : vector<8x1xf32>
    %19 = vector.broadcast %18 : vector<8x1xf32> to vector<8x1250xf32>
    %20 = arith.mulf %15, %19 : vector<8x1250xf32>
    %c0_8 = arith.constant 0 : index
    %c0_9 = arith.constant 0 : index
    %21 = vector.load %arg2[%c0_8, %c0_9] : memref<8x1xf32, #tpu.memory_space<vmem>>, vector<8x1xf32>
    %22 = vector.broadcast %21 : vector<8x1xf32> to vector<8x1250xf32>
    %23 = arith.mulf %20, %22 : vector<8x1250xf32>
    %c0_10 = arith.constant 0 : index
    %c0_11 = arith.constant 0 : index
    %24 = vector.load %arg3[%c0_10, %c0_11] : memref<8x1xf32, #tpu.memory_space<vmem>>, vector<8x1xf32>
    %25 = vector.broadcast %24 : vector<8x1xf32> to vector<8x1250xf32>
    %26 = arith.addf %23, %25 : vector<8x1250xf32>
    %cst_12 = arith.constant 0.000000e+00 : f32
    %27 = vector.broadcast %cst_12 : f32 to vector<8x1250xf32>
    %28 = arith.cmpf ogt, %26, %27 : vector<8x1250xf32>
    %cst_13 = arith.constant 2.000000e-01 : f32
    %29 = vector.broadcast %cst_13 : f32 to vector<8x1250xf32>
    %30 = arith.mulf %29, %26 : vector<8x1250xf32>
    %31 = arith.select %28, %26, %30 : vector<8x1250xi1>, vector<8x1250xf32>
    %c0_14 = arith.constant 0 : index
    %c0_15 = arith.constant 0 : index
    %32 = vector.load %arg4[%c0_14, %c0_15] : memref<8x1250xf32, #tpu.memory_space<vmem>>, vector<8x1250xf32>
    tpu.vector_store %arg4[%c0_14, %c0_15], %31 {strides = array<i32>} : memref<8x1250xf32, #tpu.memory_space<vmem>>, vector<8x1250xf32>,
    return
  }
}

module attributes {stable_mosaic.version = 11 : i64} {
  func.func @_convmm_tanh_kernel(%arg0: memref<128x1568xf32, #tpu.memory_space<vmem>>, %arg1: memref<1x128xf32, #tpu.memory_space<vmem>>, %arg2: memref<1x1568xf32, #tpu.memory_space<vmem>>) attributes {dimension_semantics = [], scalar_prefetch = 0 : i64, scratch_operands = 0 : i64, tpu.core_type = #tpu.core_type<tc>} {
    %c0 = arith.constant 0 : index
    %c0_0 = arith.constant 0 : index
    %0 = vector.load %arg1[%c0, %c0_0] : memref<1x128xf32, #tpu.memory_space<vmem>>, vector<1x128xf32>
    %c0_1 = arith.constant 0 : index
    %c0_2 = arith.constant 0 : index
    %1 = vector.load %arg0[%c0_1, %c0_2] : memref<128x1568xf32, #tpu.memory_space<vmem>>, vector<128x1568xf32>
    %cst = arith.constant dense<0.000000e+00> : vector<1x1568xf32>
    %2 = tpu.matmul %0, %1, %cst {dimension_numbers = #tpu.dot_dimension_numbers<[1], [0], [0], [1], [0, 0, 1, 1], [], []>} : vector<1x128xf32>, vector<128x1568xf32>, vector<1x1568xf32> -> vector<1x1568xf32>
    %3 = math.tanh %2 : vector<1x1568xf32>
    %c0_3 = arith.constant 0 : index
    %c0_4 = arith.constant 0 : index
    %4 = vector.load %arg2[%c0_3, %c0_4] : memref<1x1568xf32, #tpu.memory_space<vmem>>, vector<1x1568xf32>
    tpu.vector_store %arg2[%c0_3, %c0_4], %3 {strides = array<i32>} : memref<1x1568xf32, #tpu.memory_space<vmem>>, vector<1x1568xf32>,
    return
  }
}

</mosaic_0001>

<bundles_post_ra>
// kernel: generator_forward.5
= control target key start
LH: loop header
LB: loop body
LE: loop exit
PB: predicated region body
PF: predicated region fallthrough
CT: control target
= control target key end

     0   :  { %8 = vsyncpa [#allocation3], 0  ;;  %s951_s0 = inlined_call_operand.vmem [shape: f32[2,24], index: 0, kind: input, shape index: {}]   ;;  %s952_s1 = inlined_call_operand.hbm [shape: f32[24,1568], index: 1, kind: input, shape index: {}]   ;;  %s953_s2 = inlined_call_operand.hbm [shape: f32[1,1568], index: 2, kind: input, shape index: {}]   ;;  %s954_s3 = inlined_call_operand.vmem [shape: f32[2,1568], index: 3, kind: output, shape index: {}]  }
   0x1   :  { %9 = vsyncpa [#allocation5], 0  ;;  %s845_s12 = smov [#allocation2]  }
   0x2   :  { %s17_s13 = sshll.u32 %s845_s12, 4  ;;  %s18_s13 = int_to_ptr.vmem [resolvable:$true] %s17_s13 }
   0x3   :  { %s809_s14 = scalar_lea.vmem %s18_s13, 4992  ;;  %p814_p1 = scmp.lt.s32.totalorder %s18_s13, %s18_s13 }
   0x4   :  { %p810_p0 = scmp.ne.s32.totalorder %s18_s13, %s809_s14  ;;  %p815_p2 = scmp.lt.s32.totalorder %s809_s14, %s809_s14 }
   0x6   :  { %p816_p3 = por %p815_p2, %p814_p1 }
   0x8   :  { %p817_p4 = pnand %p816_p3, %p810_p0 }
   0xa   :  { %820 = shalt.err (!%p817_p4)
}
   0xb   :  { %s846_s15 = smov 1664   ;;  %s847_s16 = smov 104  }
   0xc   :  { %23 = dma.hbm_to_vmem [thread:$0]  %s952_s1, 4992, %s18_s13, [#allocation3], %s846_s15, %s846_s15, %s847_s16  }
   0xd   :  { %s848_s19 = smov [#allocation4]  }
   0xe   :  { %s30_s20 = sshll.u32 %s848_s19, 4  ;;  %s31_s20 = int_to_ptr.vmem [resolvable:$true] %s30_s20 }
   0xf   :  { %s829_s21 = scalar_lea.vmem %s31_s20, 208  ;;  %s833_s22 = scalar_lea.vmem %s31_s20, 224 }
  0x10   :  { %p830_p5 = scmp.ne.s32.totalorder %s31_s20, %s829_s21  ;;  %p834_p6 = scmp.lt.s32.totalorder %s31_s20, %s31_s20 }
  0x11   :  { %p835_p7 = scmp.lt.s32.totalorder %s833_s22, %s829_s21 }
  0x13   :  { %p836_p8 = por %p835_p7, %p834_p6 }
  0x15   :  { %p837_p9 = pnand %p836_p8, %p830_p5 }
  0x17   :  { %840 = shalt.err (!%p837_p9)
}
  0x18   :  { %33 = dma.hbm_to_vmem [thread:$0]  %s953_s2, 208, %s31_s20, [#allocation5]  }
  0x19   :  { %841 = dma.done.wait [#allocation3], 4992  }
  0x1a   :  { %842 = vsyncadd [#allocation3], 4294962304 }
  0x1b   :  { %843 = dma.done.wait [#allocation5], 208  }
  0x1c   :  { %844 = vsyncadd [#allocation5], 4294967088  ;;  %v849_v0 = vmov 0.0   ;;  %v68_v1 = vld [vmem:[#allocation2 + $0xd8] sm:$0xff]  ;;  %v70_v2 = vld [vmem:[#allocation2 + $0xe8] sm:$0xff]  ;;  %vm149_vm0 = vcmask 195584   ;;  %v84_v41 = vlaneseq }
  0x1d   :  { %217 = vmatprep.mubr.f32.mxu0 %v849_v0  ;;  %288 = vmatprep.mubr.f32.mxu1 %v849_v0  ;;  %v67_v3 = vld [vmem:[#allocation2 + $0xd0] sm:$0xff]  ;;  %v69_v4 = vld [vmem:[#allocation2 + $0xe0] sm:$0xff]  ;;  %v54_v7 = vld [vmem:[#allocation2 + $0x68] sm:$0xff]  ;;  %vm850_vm1 = vmmov 0   ;;  %v851_v50 = vmov 1983009808  }
  0x1e   :  { %179 = vmatprep.subr.mxu0 %v68_v1  ;;  %250 = vmatprep.subr.mxu1 %v70_v2  ;;  %v55_v5 = vld [vmem:[#allocation2 + $0x70] sm:$0xff]  ;;  %v57_v6 = vld [vmem:[#allocation2 + $0x80] sm:$0xff]  ;;  %v56_v8 = vld [vmem:[#allocation2 + $0x78] sm:$0xff]  ;;  %v907_v42 = vshrl.u32 %v84_v41, 7  ;;  %v704_v51 = vunpack.c.l.s4 %v851_v50  ;;  %vm766_vm15 = vcmask 254976  }
  0x1f   :  { %180 = vmatpush1.msra.mxu0 %v67_v3  ;;  %251 = vmatpush1.msra.mxu1 %v69_v4  ;;  %v42_v9 = vld [vmem:[#allocation2 + $0x8] sm:$0xff]  ;;  %v44_v10 = vld [vmem:[#allocation2 + $0x18] sm:$0xff]  ;;  %v41_v11 = vld [vmem:[#allocation2] sm:$0xff] }
  0x20   :  { %181 = vmatprep.subr.mxu0 %v55_v5  ;;  %252 = vmatprep.subr.mxu1 %v57_v6  ;;  %v43_v12 = vld [vmem:[#allocation2 + $0x10] sm:$0xff]  ;;  %v883_v13 = vld [vmem:[%s951_s0] sm:$0x3]  ;;  %v72_v14 = vld [vmem:[#allocation2 + $0xf8] sm:$0xff]  ;;  %v86_v43 = vsub.s32 0, %v907_v42  ;;  %v94_v44 = vsub.s32 2, %v907_v42  ;;  %v705_v62 = vunpack.c.0.s8 %v704_v51 }
  0x21   :  { %182 = vmatpush1.msra.mxu0 %v54_v7  ;;  %253 = vmatpush1.msra.mxu1 %v56_v8  ;;  %v74_v15 = vld [vmem:[#allocation2 + $0x108] sm:$0xff]  ;;  %v71_v16 = vld [vmem:[#allocation2 + $0xf0] sm:$0xff]  ;;  %v73_v17 = vld [vmem:[#allocation2 + $0x100] sm:$0xff]  ;;  %v90_v46 = vsub.s32 1, %v907_v42  ;;  %v98_v47 = vsub.s32 3, %v907_v42  ;;  %v102_v58 = vsub.s32 4, %v907_v42 }
  0x22   :  { %183 = vmatprep.subr.mxu0 %v42_v9  ;;  %254 = vmatprep.subr.mxu1 %v44_v10  ;;  %v59_v18 = vld [vmem:[#allocation2 + $0x90] sm:$0xff]  ;;  %v61_v19 = vld [vmem:[#allocation2 + $0xa0] sm:$0xff]  ;;  %v58_v20 = vld [vmem:[#allocation2 + $0x88] sm:$0xff]  ;;  %v110_v59 = vsub.s32 6, %v907_v42  ;;  %v106_v63 = vsub.s32 5, %v907_v42  ;;  %v924_v9 = vsub.s32 %v705_v62, %v907_v42 }
  0x23   :  { %184 = vmatpush1.msra.mxu0 %v41_v11  ;;  %255 = vmatpush1.msra.mxu1 %v43_v12  ;;  %v60_v21 = vld [vmem:[#allocation2 + $0x98] sm:$0xff]  ;;  %v46_v22 = vld [vmem:[#allocation2 + $0x28] sm:$0xff]  ;;  %v45_v24 = vld [vmem:[#allocation2 + $0x20] sm:$0xff] }
  0x24   :  { %774 = vmatmul.mubr.msk.f32.vlgmr.msra.gmra.mxu0 %vm149_vm0, %v883_v13  ;;  %775 = vmatmul.mubr.msk.f32.vlgmr.msra.gmra.mxu1 %vm149_vm0, %v883_v13  ;;  %v48_v23 = vld [vmem:[#allocation2 + $0x38] sm:$0xff]  ;;  %v47_v25 = vld [vmem:[#allocation2 + $0x30] sm:$0xff]  ;;  %v78_v27 = vld [vmem:[#allocation2 + $0x128] sm:$0xff] }
  0x25   :  { %321 = vmatprep.subr.mxu0 %v72_v14  ;;  %392 = vmatprep.subr.mxu1 %v74_v15  ;;  %v76_v26 = vld [vmem:[#allocation2 + $0x118] sm:$0xff]  ;;  %v75_v28 = vld [vmem:[#allocation2 + $0x110] sm:$0xff]  ;;  %v77_v29 = vld [vmem:[#allocation2 + $0x120] sm:$0xff] }
  0x26   :  { %322 = vmatpush1.msra.mxu0 %v71_v16  ;;  %393 = vmatpush1.msra.mxu1 %v73_v17  ;;  %v63_v30 = vld [vmem:[#allocation2 + $0xb0] sm:$0xff]  ;;  %v65_v31 = vld [vmem:[#allocation2 + $0xc0] sm:$0xff]  ;;  %v62_v32 = vld [vmem:[#allocation2 + $0xa8] sm:$0xff] }
  0x27   :  { %323 = vmatprep.subr.mxu0 %v59_v18  ;;  %394 = vmatprep.subr.mxu1 %v61_v19  ;;  %v64_v33 = vld [vmem:[#allocation2 + $0xb8] sm:$0xff]  ;;  %v50_v34 = vld [vmem:[#allocation2 + $0x48] sm:$0xff]  ;;  %v49_v36 = vld [vmem:[#allocation2 + $0x40] sm:$0xff] }
  0x28   :  { %324 = vmatpush1.msra.mxu0 %v58_v20  ;;  %395 = vmatpush1.msra.mxu1 %v60_v21  ;;  %v52_v35 = vld [vmem:[#allocation2 + $0x58] sm:$0xff]  ;;  %v51_v37 = vld [vmem:[#allocation2 + $0x50] sm:$0xff]  ;;  %v66_v39 = vld [vmem:[#allocation2 + $0xc8] sm:$0xff] }
  0x29   :  { %325 = vmatprep.subr.mxu0 %v46_v22  ;;  %396 = vmatprep.subr.mxu1 %v48_v23  ;;  %v79_v38 = vld [vmem:[#allocation2 + $0x130] sm:$0xff]  ;;  %v53_v40 = vld [vmem:[#allocation2 + $0x60] sm:$0xff]  ;;  %v80_v45 = vld [vmem:[#allocation4] sm:$0xff] }
  0x2a   :  { %326 = vmatpush1.msra.mxu0 %v45_v24  ;;  %359 = vmatprep.mubr.f32.mxu0 %v849_v0  ;;  %v87_v48 = vrot.slane %v80_v45, %v86_v43  ;;  %v95_v49 = vrot.slane %v80_v45, %v94_v44  ;;  %v91_v54 = vrot.slane %v80_v45, %v90_v46  ;;  %v81_v18 = vld [vmem:[#allocation4 + $0x8] sm:$0x1f] }
  0x2b   :  { %397 = vmatpush1.msra.mxu1 %v47_v25  ;;  %430 = vmatprep.mubr.f32.mxu1 %v849_v0  ;;  %v99_v55 = vrot.slane %v80_v45, %v98_v47  ;;  %v103_v5 = vrot.slane %v80_v45, %v102_v58  ;;  %v111_v6 = vrot.slane %v80_v45, %v110_v59 }
  0x2c   :  { %776 = vmatmul.mubr.msk.f32.vlgmr.msra.gmra.mxu0 %vm149_vm0, %v883_v13  ;;  %777 = vmatmul.mubr.msk.f32.vlgmr.msra.gmra.mxu1 %vm149_vm0, %v883_v13  ;;  %v107_v10 = vrot.slane %v80_v45, %v106_v63 }
  0x2d   :  { %463 = vmatprep.subr.mxu0 %v76_v26  ;;  %534 = vmatprep.subr.mxu1 %v78_v27  ;;  %v119_v27 = vrot.slane %v81_v18, %v86_v43  ;;  %v131_v43 = vrot.slane %v81_v18, %v98_v47 }
  0x2e   :  { %464 = vmatpush1.msra.mxu0 %v75_v28  ;;  %535 = vmatpush1.msra.mxu1 %v77_v29 }
  0x2f   :  { %465 = vmatprep.subr.mxu0 %v63_v30  ;;  %536 = vmatprep.subr.mxu1 %v65_v31 }
  0x30   :  { %466 = vmatpush1.msra.mxu0 %v62_v32  ;;  %537 = vmatpush1.msra.mxu1 %v64_v33  ;;  %v127_v33 = vrot.slane %v81_v18, %v94_v44 }
  0x31   :  { %467 = vmatprep.subr.mxu0 %v50_v34  ;;  %538 = vmatprep.subr.mxu1 %v52_v35 }
  0x32   :  { %468 = vmatpush1.msra.mxu0 %v49_v36  ;;  %501 = vmatprep.mubr.f32.mxu0 %v849_v0  ;;  %v123_v36 = vrot.slane %v81_v18, %v90_v46  ;;  %v135_v46 = vrot.slane %v81_v18, %v102_v58 }
  0x33   :  { %539 = vmatpush1.msra.mxu1 %v51_v37  ;;  %572 = vmatprep.mubr.f32.mxu1 %v849_v0 }
  0x34   :  { %778 = vmatmul.mubr.msk.f32.vlgmr.msra.gmra.mxu0 %vm149_vm0, %v883_v13  ;;  %779 = vmatmul.mubr.msk.f32.vlgmr.msra.gmra.mxu1 %vm149_vm0, %v883_v13 }
  0x35   :  { %785 = vmatprep.subr.mxu0 %v849_v0  ;;  %791 = vmatprep.mubr.msk.f32.mxu0 %vm850_vm1, %v849_v0 }
  0x36   :  { %786 = vmatpush3.msra.mxu0 %v79_v38 }
  0x37   :  { %787 = vmatprep.subr.mxu0 %v849_v0 }
  0x38   :  { %788 = vmatpush3.msra.mxu0 %v66_v39 }
  0x39   :  { %789 = vmatprep.subr.mxu0 %v849_v0  ;;  %v114_v0 = vsub.s32 7, %v907_v42 }
  0x3a   :  { %790 = vmatpush3.msra.mxu0 %v53_v40 }
  0x3b   :  { %792 = vmatmul.mubr.msk.f32.vlgmr.msra.gmra.mxu0 %vm149_vm0, %v883_v13  ;;  %v115_v11 = vrot.slane %v80_v45, %v114_v0 }
  0xe4   :  { %v219_v52 = vpop.f32.mrf.mxu0  ;;  %v290_v53 = vpop.f32.mrf.mxu1 }
  0xe5   :  { %v220_v56 = vadd.f32 %v219_v52, %v87_v48  ;;  %v291_v57 = vadd.f32 %v290_v53, %v95_v49 }
  0xe6   :  { %v221_v60 = vpop.f32.mrf.mxu0  ;;  %v292_v61 = vpop.f32.mrf.mxu1 }
  0xe7   :  { %v662_v1 = vmul.f32 0.2, %v220_v56  ;;  %v664_v2 = vmul.f32 0.2, %v291_v57  ;;  %v222_v3 = vadd.f32 %v221_v60, %v91_v54  ;;  %v293_v4 = vadd.f32 %v292_v61, %v99_v55 }
  0xe8   :  { %vm649_vm2 = vcmp.gt.f32.partialorder %v220_v56, 0.0  ;;  %vm651_vm3 = vcmp.gt.f32.partialorder %v291_v57, 0.0 }
  0xe9   :  { %vm650_vm4 = vcmp.gt.f32.partialorder %v222_v3, 0.0  ;;  %v663_v7 = vmul.f32 0.2, %v222_v3  ;;  %vm652_vm5 = vcmp.gt.f32.partialorder %v293_v4, 0.0  ;;  %v665_v8 = vmul.f32 0.2, %v293_v4 }
  0xea   :  { %v675_v12 = vsel %vm649_vm2, %v220_v56, %v662_v1  ;;  %v677_v13 = vsel %vm651_vm3, %v291_v57, %v664_v2 }
  0xeb   :  { %v676_v14 = vsel %vm650_vm4, %v222_v3, %v663_v7  ;;  %v678_v15 = vsel %vm652_vm5, %v293_v4, %v665_v8 }
  0xec   :  { %v361_v16 = vpop.f32.mrf.mxu0  ;;  %v432_v17 = vpop.f32.mrf.mxu1  ;;  %v701_v19 = vcombine.low %v675_v12, %v676_v14  ;;  %v702_v20 = vcombine.low %v677_v13, %v678_v15 }
  0xed   :  { %v362_v21 = vadd.f32 %v361_v16, %v103_v5  ;;  %v433_v22 = vadd.f32 %v432_v17, %v111_v6 }
  0xee   :  { %v363_v23 = vpop.f32.mrf.mxu0  ;;  %v434_v24 = vpop.f32.mrf.mxu1  ;;  %v709_v25 = vrot.slane %v701_v19, %v924_v9  ;;  %v716_v26 = vrot.slane %v702_v20, %v924_v9 }
  0xef   :  { %v666_v28 = vmul.f32 0.2, %v362_v21  ;;  %v668_v29 = vmul.f32 0.2, %v433_v22  ;;  %v364_v30 = vadd.f32 %v363_v23, %v107_v10  ;;  %v435_v31 = vadd.f32 %v434_v24, %v115_v11 }
  0xf0   :  { %v717_v32 = vcombine.low %v709_v25, %v716_v26  ;;  %vm653_vm6 = vcmp.gt.f32.partialorder %v362_v21, 0.0  ;;  %vm655_vm7 = vcmp.gt.f32.partialorder %v433_v22, 0.0 }
  0xf1   :  { %vm654_vm8 = vcmp.gt.f32.partialorder %v364_v30, 0.0  ;;  %v667_v34 = vmul.f32 0.2, %v364_v30  ;;  %vm656_vm9 = vcmp.gt.f32.partialorder %v435_v31, 0.0  ;;  %v669_v35 = vmul.f32 0.2, %v435_v31 }
  0xf2   :  { %763 = vst [vmem:[%s954_s3] sm:$0xff] %v717_v32  ;;  %v679_v37 = vsel %vm653_vm6, %v362_v21, %v666_v28  ;;  %v681_v38 = vsel %vm655_vm7, %v433_v22, %v668_v29 }
  0xf3   :  { %v680_v39 = vsel %vm654_vm8, %v364_v30, %v667_v34  ;;  %v682_v45 = vsel %vm656_vm9, %v435_v31, %v669_v35 }
  0xf4   :  { %v503_v40 = vpop.f32.mrf.mxu0  ;;  %v574_v41 = vpop.f32.mrf.mxu1  ;;  %v718_v44 = vcombine.low %v679_v37, %v680_v39  ;;  %v719_v50 = vcombine.low %v681_v38, %v682_v45 }
  0xf5   :  { %v504_v48 = vadd.f32 %v503_v40, %v119_v27  ;;  %v575_v49 = vadd.f32 %v574_v41, %v127_v33 }
  0xf6   :  { %v505_v51 = vpop.f32.mrf.mxu0  ;;  %v576_v52 = vpop.f32.mrf.mxu1  ;;  %v726_v53 = vrot.slane %v718_v44, %v924_v9  ;;  %v733_v54 = vrot.slane %v719_v50, %v924_v9 }
  0xf7   :  { %v670_v55 = vmul.f32 0.2, %v504_v48  ;;  %v506_v56 = vadd.f32 %v505_v51, %v123_v36  ;;  %v577_v57 = vadd.f32 %v576_v52, %v131_v43  ;;  %vm657_vm10 = vcmp.gt.f32.partialorder %v504_v48, 0.0 }
  0xf8   :  { %v672_v59 = vmul.f32 0.2, %v575_v49  ;;  %v734_v47 = vcombine.low %v726_v53, %v733_v54  ;;  %vm659_vm11 = vcmp.gt.f32.partialorder %v575_v49, 0.0 }
  0xf9   :  { %vm658_vm12 = vcmp.gt.f32.partialorder %v506_v56, 0.0  ;;  %v671_v60 = vmul.f32 0.2, %v506_v56  ;;  %vm660_vm13 = vcmp.gt.f32.partialorder %v577_v57, 0.0  ;;  %v673_v61 = vmul.f32 0.2, %v577_v57 }
  0xfa   :  { %764 = vst [vmem:[%s954_s3 + $0x8] sm:$0xff] %v734_v47  ;;  %v683_v42 = vsel %vm657_vm10, %v504_v48, %v670_v55  ;;  %v685_v0 = vsel %vm659_vm11, %v575_v49, %v672_v59 }
  0xfb   :  { %v645_v62 = vpop.f32.mrf.mxu0  ;;  %v684_v58 = vsel %vm658_vm12, %v506_v56, %v671_v60  ;;  %v686_v2 = vsel %vm660_vm13, %v577_v57, %v673_v61 }
  0xfc   :  { %v646_v63 = vadd.f32 %v645_v62, %v135_v46  ;;  %v735_v1 = vcombine.low %v683_v42, %v684_v58  ;;  %v736_v4 = vcombine.low %v685_v0, %v686_v2 }
  0xfd   :  { %v793_v3 = vpop.f32.mrf.mxu0 }
  0xfe   :  { %vm661_vm14 = vcmp.gt.f32.partialorder %v646_v63, 0.0  ;;  %v674_v5 = vmul.f32 0.2, %v646_v63  ;;  %v743_v6 = vrot.slane %v735_v1, %v924_v9  ;;  %v750_v7 = vrot.slane %v736_v4, %v924_v9 }
 0x100   :  { %v687_v8 = vsel %vm661_vm14, %v646_v63, %v674_v5  ;;  %v751_v11 = vcombine.low %v743_v6, %v750_v7 }
 0x101   :  { %v758_v10 = vrot.slane %v687_v8, %v924_v9 }
 0x102   :  { %765 = vst [vmem:[%s954_s3 + $0x10] sm:$0xff] %v751_v11 }
 0x103   :  { %767 = vst.msk [vmem:[%s954_s3 + $0x18] sm:$0x3] %vm766_vm15, %v758_v10 }
 0x104   :  { %772 = vsyncpa [#allocation3], 1 }
 0x105   :  { %773 = vsyncpa [#allocation5], 1 }

// kernel: generator_forward.6
= control target key start
LH: loop header
LB: loop body
LE: loop exit
PB: predicated region body
PF: predicated region fallthrough
CT: control target
= control target key end

     0   :  { %vm59_vm0 = vcmask 261120   ;;  %v348_v42 = vmov 0   ;;  %vm216_vm1 = vcmask 801792   ;;  %s524_s0 = inlined_call_operand.vmem [shape: f32[288,98], index: 0, kind: input, shape index: {}]   ;;  %s525_s1 = inlined_call_operand.vmem [shape: f32[16,288], index: 1, kind: input, shape index: {}]   ;;  %s526_s2 = inlined_call_operand.vmem [shape: f32[16,1], index: 2, kind: input, shape index: {}]   ;;  %s527_s3 = inlined_call_operand.vmem [shape: f32[16,1], index: 3, kind: input, shape index: {}]   ;;  %s528_s4 = inlined_call_operand.vmem [shape: f32[16,98], index: 4, kind: output, shape index: {}]  }
   0x1   :  { %v54_v0 = vld [vmem:[%s524_s0 + $0xf8] sm:$0xff]  ;;  %v53_v2 = vld [vmem:[%s524_s0 + $0xf0] sm:$0xff]  ;;  %v52_v4 = vld [vmem:[%s524_s0 + $0xe8] sm:$0xff]  ;;  %343 = vset.pattern.permute.xlu1 %v348_v42  ;;  %342 = vset.pattern.permute.xlu0 %v348_v42 }
   0x2   :  { %v38_v1 = vld [vmem:[%s524_s0 + $0x78] sm:$0xff]  ;;  %286 = vmatprep.subr.mxu0 %v54_v0  ;;  %v37_v3 = vld [vmem:[%s524_s0 + $0x70] sm:$0xff]  ;;  %v36_v5 = vld [vmem:[%s524_s0 + $0x68] sm:$0xff] }
   0x3   :  { %287 = vmatpush3.msra.mxu0 %v38_v1  ;;  %v51_v6 = vld [vmem:[%s524_s0 + $0xe0] sm:$0xff]  ;;  %v50_v8 = vld [vmem:[%s524_s0 + $0xd8] sm:$0xff]  ;;  %v49_v10 = vld [vmem:[%s524_s0 + $0xd0] sm:$0xff] }
   0x4   :  { %288 = vmatprep.subr.mxu0 %v53_v2  ;;  %v35_v7 = vld [vmem:[%s524_s0 + $0x60] sm:$0xff]  ;;  %v34_v9 = vld [vmem:[%s524_s0 + $0x58] sm:$0xff]  ;;  %v33_v12 = vld [vmem:[%s524_s0 + $0x50] sm:$0xff] }
   0x5   :  { %289 = vmatpush3.msra.mxu0 %v37_v3  ;;  %v58_v11 = vld [vmem:[%s524_s0 + $0x118] sm:$0xff]  ;;  %v57_v13 = vld [vmem:[%s524_s0 + $0x110] sm:$0xff]  ;;  %v48_v14 = vld [vmem:[%s524_s0 + $0xc8] sm:$0xff] }
   0x6   :  { %290 = vmatprep.subr.mxu0 %v52_v4  ;;  %330 = vmatprep.subr.mxu1 %v58_v11  ;;  %v56_v15 = vld [vmem:[%s524_s0 + $0x108] sm:$0xff]  ;;  %v47_v17 = vld [vmem:[%s524_s0 + $0xc0] sm:$0xff]  ;;  %v46_v21 = vld [vmem:[%s524_s0 + $0xb8] sm:$0xff] }
   0x7   :  { %291 = vmatpush3.msra.mxu0 %v36_v5  ;;  %331 = vmatpush3.msra.mxu1 %v58_v11  ;;  %v32_v16 = vld [vmem:[%s524_s0 + $0x48] sm:$0xff]  ;;  %v55_v18 = vld [vmem:[%s524_s0 + $0x100] sm:$0xff]  ;;  %v30_v22 = vld [vmem:[%s524_s0 + $0x38] sm:$0xff] }
   0x8   :  { %292 = vmatprep.subr.mxu0 %v51_v6  ;;  %332 = vmatprep.subr.mxu1 %v57_v13  ;;  %v31_v19 = vld [vmem:[%s524_s0 + $0x40] sm:$0xff]  ;;  %v18_v20 = vld [vmem:[%s525_s1 + $0x8] sm:$0xff]  ;;  %v19_v23 = vld [vmem:[%s525_s1 + $0x10] sm:$0xff] }
   0x9   :  { %293 = vmatpush3.msra.mxu0 %v35_v7  ;;  %333 = vmatpush3.msra.mxu1 %v57_v13  ;;  %v45_v24 = vld [vmem:[%s524_s0 + $0xb0] sm:$0xff]  ;;  %v22_v25 = vld [vmem:[%s525_s1 + $0x28] sm:$0xff]  ;;  %v43_v29 = vld [vmem:[%s524_s0 + $0xa0] sm:$0xff] }
   0xa   :  { %294 = vmatprep.subr.mxu0 %v50_v8  ;;  %334 = vmatprep.subr.mxu1 %v56_v15  ;;  %v29_v26 = vld [vmem:[%s524_s0 + $0x30] sm:$0xff]  ;;  %v44_v27 = vld [vmem:[%s524_s0 + $0xa8] sm:$0xff]  ;;  %v27_v30 = vld [vmem:[%s524_s0 + $0x20] sm:$0xff] }
   0xb   :  { %295 = vmatpush3.msra.mxu0 %v34_v9  ;;  %335 = vmatpush3.msra.mxu1 %v56_v15  ;;  %v28_v28 = vld [vmem:[%s524_s0 + $0x28] sm:$0xff]  ;;  %v42_v31 = vld [vmem:[%s524_s0 + $0x98] sm:$0xff]  ;;  %v41_v33 = vld [vmem:[%s524_s0 + $0x90] sm:$0xff] }
   0xc   :  { %296 = vmatprep.subr.mxu0 %v49_v10  ;;  %336 = vmatprep.subr.mxu1 %v55_v18  ;;  %v26_v32 = vld [vmem:[%s524_s0 + $0x18] sm:$0xff]  ;;  %v25_v34 = vld [vmem:[%s524_s0 + $0x10] sm:$0xff]  ;;  %v40_v35 = vld [vmem:[%s524_s0 + $0x88] sm:$0xff] }
   0xd   :  { %297 = vmatpush3.msra.mxu0 %v33_v12  ;;  %130 = vmatprep.mubr.f32.mxu0 %v18_v20  ;;  %v24_v36 = vld [vmem:[%s524_s0 + $0x8] sm:$0xff]  ;;  %v39_v37 = vld [vmem:[%s524_s0 + $0x80] sm:$0xff]  ;;  %v20_v41 = vld [vmem:[%s525_s1 + $0x18] sm:$0xff] }
   0xe   :  { %298 = vmatprep.subr.mxu0 %v48_v14  ;;  %337 = vmatpush3.msra.mxu1 %v55_v18  ;;  %v23_v38 = vld [vmem:[%s524_s0] sm:$0xff]  ;;  %v245_v43 = vld [vmem:[%s526_s2 + $0x8] sm:$0xff] }
   0xf   :  { %299 = vmatpush3.msra.mxu0 %v32_v16  ;;  %338 = vmatprep.mubr.msk.f32.mxu1 %vm59_vm0, %v19_v23  ;;  %v17_v39 = vld [vmem:[%s525_s1] sm:$0xff]  ;;  %v259_v4 = vld [vmem:[%s527_s3 + $0x8] sm:$0xff] }
  0x10   :  { %300 = vmatprep.subr.mxu0 %v47_v17  ;;  %339 = vmatmul.mubr.msk.f32.vlgmr.msra.gmra.mxu1 %vm59_vm0, %v22_v25  ;;  %v21_v40 = vld [vmem:[%s525_s1 + $0x20] sm:$0xff] }
  0x11   :  { %301 = vmatpush3.msra.mxu0 %v31_v19  ;;  %253 = vperm.xlu1 %343, %v245_v43   ;;  %v258_v44 = vld [vmem:[%s527_s3] sm:$0xff] }
  0x12   :  { %302 = vmatprep.subr.mxu0 %v46_v21  ;;  %v244_v57 = vld [vmem:[%s526_s2] sm:$0xff] }
  0x13   :  { %303 = vmatpush3.msra.mxu0 %v30_v22 }
  0x14   :  { %304 = vmatprep.subr.mxu0 %v45_v24 }
  0x15   :  { %305 = vmatpush3.msra.mxu0 %v29_v26  ;;  %262 = vperm.xlu1 %343, %v258_v44  }
  0x16   :  { %306 = vmatprep.subr.mxu0 %v44_v27 }
  0x17   :  { %307 = vmatpush3.msra.mxu0 %v28_v28 }
  0x18   :  { %308 = vmatprep.subr.mxu0 %v43_v29 }
  0x19   :  { %309 = vmatpush3.msra.mxu0 %v27_v30 }
  0x1a   :  { %310 = vmatprep.subr.mxu0 %v42_v31 }
  0x1b   :  { %311 = vmatpush3.msra.mxu0 %v26_v32 }
  0x1c   :  { %312 = vmatprep.subr.mxu0 %v41_v33 }
  0x1d   :  { %313 = vmatpush3.msra.mxu0 %v25_v34 }
  0x1e   :  { %314 = vmatprep.subr.mxu0 %v40_v35 }
  0x1f   :  { %315 = vmatpush3.msra.mxu0 %v24_v36 }
  0x20   :  { %316 = vmatprep.subr.mxu0 %v39_v37 }
  0x21   :  { %317 = vmatpush3.msra.mxu0 %v23_v38 }
  0x22   :  { %131 = vmatmul.mubr.f32.vlgmr.msra.gmra.mxu0 %v17_v39 }
  0x23   :  { %135 = vmatprep.mubr.f32.mxu0 %v21_v40 }
  0x26   :  { %136 = vmatmul.mubr.f32.gmra.mxu0 %v20_v41 }
  0x8c   :  { %v254_v5 = vpop.permute.xlu1 %253 }
  0x90   :  { %v263_v6 = vpop.permute.xlu1 %262 }
  0xd0   :  { %v340_v46 = vpop.f32.mrf.mxu1 }
  0xd2   :  { %v207_v49 = vpop.f32.mrf.mxu1 }
  0xe2   :  { %v318_v45 = vpop.f32.mrf.mxu0 }
  0xe4   :  { %v319_v47 = vpop.f32.mrf.mxu0 }
  0xe5   :  { %v320_v48 = vadd.f32 %v319_v47, %v318_v45 }
  0xe6   :  { %v321_v50 = vpop.f32.mrf.mxu0 }
  0xe7   :  { %v208_v51 = vadd.f32 %v320_v48, %v207_v49 }
  0xe8   :  { %v322_v52 = vpop.f32.mrf.mxu0 }
  0xe9   :  { %v323_v53 = vadd.f32 %v322_v52, %v321_v50  ;;  %v217_v54 = vsel %vm216_vm1, %v208_v51, 0.0 }
  0xea   :  { %218 = vadd.xlane.f32.xlu0 %v217_v54 }
  0xeb   :  { %v213_v55 = vadd.f32 %v340_v46, %v323_v53 }
  0xed   :  { %v220_v56 = vsel %vm216_vm1, %v213_v55, 0.0 }
  0xee   :  { %221 = vadd.xlane.f32.xlu0 %v220_v56 }
 0x104   :  { %248 = vperm.xlu0 %342, %v244_v57  }
 0x173   :  { %v219_v58 = vpop.xlane.xlu0 %218 }
 0x174   :  { %v224_v59 = vmul.f32 0.010204081, %v219_v58 }
 0x176   :  { %v226_v60 = vsub.f32 %v208_v51, %v224_v59 }
 0x177   :  { %v222_v61 = vpop.xlane.xlu0 %221 }
 0x178   :  { %v225_v62 = vmul.f32 0.010204081, %v222_v61  ;;  %v228_v63 = vmul.f32 %v226_v60, %v226_v60 }
 0x17a   :  { %v227_v0 = vsub.f32 %v213_v55, %v225_v62  ;;  %v230_v1 = vsel %vm216_vm1, %v228_v63, 0.0 }
 0x17b   :  { %231 = vadd.xlane.f32.xlu1 %v230_v1 }
 0x17c   :  { %v229_v2 = vmul.f32 %v227_v0, %v227_v0 }
 0x17e   :  { %v233_v3 = vsel %vm216_vm1, %v229_v2, 0.0 }
 0x17f   :  { %234 = vadd.xlane.f32.xlu1 %v233_v3  ;;  %v249_v14 = vpop.permute.xlu0 %248 }
 0x190   :  { %267 = vperm.xlu1 %343, %v259_v4  }
 0x204   :  { %v232_v7 = vpop.xlane.xlu1 %231 }
 0x205   :  { %v236_v8 = vmul.f32 0.010204081, %v232_v7 }
 0x207   :  { %v238_v9 = vadd.f32 1e-05, %v236_v8 }
 0x208   :  { %v235_v10 = vpop.xlane.xlu1 %234 }
 0x209   :  { %344 = vrsqrt.f32 %v238_v9  ;;  %v237_v11 = vmul.f32 0.010204081, %v235_v10 }
 0x20b   :  { %v239_v12 = vadd.f32 1e-05, %v237_v11 }
 0x20c   :  { %v268_v22 = vpop.permute.xlu1 %267 }
 0x20d   :  { %346 = vrsqrt.f32 %v239_v12 }
 0x216   :  { %v345_v13 = vpop.eup %344 }
 0x217   :  { %v242_v15 = vmul.f32 %v345_v13, %v226_v60 }
 0x219   :  { %v256_v16 = vmul.f32 %v249_v14, %v242_v15 }
 0x21a   :  { %v347_v17 = vpop.eup %346 }
 0x21b   :  { %v243_v18 = vmul.f32 %v347_v17, %v227_v0  ;;  %v270_v19 = vadd.f32 %v263_v6, %v256_v16 }
 0x21d   :  { %v257_v20 = vmul.f32 %v254_v5, %v243_v18  ;;  %vm272_vm2 = vcmp.gt.f32.partialorder %v270_v19, 0.0  ;;  %v274_v21 = vmul.f32 0.2, %v270_v19 }
 0x21f   :  { %v271_v23 = vadd.f32 %v268_v22, %v257_v20  ;;  %v276_v24 = vsel %vm272_vm2, %v270_v19, %v274_v21 }
 0x220   :  { %278 = vst.msk [vmem:[%s528_s4] sm:$0xff] %vm216_vm1, %v276_v24 }
 0x221   :  { %vm273_vm3 = vcmp.gt.f32.partialorder %v271_v23, 0.0  ;;  %v275_v25 = vmul.f32 0.2, %v271_v23 }
 0x223   :  { %v277_v26 = vsel %vm273_vm3, %v271_v23, %v275_v25 }
 0x224   :  { %279 = vst.msk [vmem:[%s528_s4 + $0x8] sm:$0xff] %vm216_vm1, %v277_v26 }

// kernel: generator_forward.7
= control target key start
LH: loop header
LB: loop body
LE: loop exit
PB: predicated region body
PF: predicated region fallthrough
CT: control target
= control target key end

     0   :  { %v285_v2 = vmov 0.0   ;;  %vm73_vm0 = vcmask 130048   ;;  %vm219_vm1 = vcmask 670720   ;;  %s516_s0 = inlined_call_operand.vmem [shape: f32[144,338], index: 0, kind: input, shape index: {}]   ;;  %s517_s1 = inlined_call_operand.vmem [shape: f32[8,144], index: 1, kind: input, shape index: {}]   ;;  %s518_s2 = inlined_call_operand.vmem [shape: f32[8,1], index: 2, kind: input, shape index: {}]   ;;  %s519_s3 = inlined_call_operand.vmem [shape: f32[8,1], index: 3, kind: input, shape index: {}]   ;;  %s520_s4 = inlined_call_operand.vmem [shape: f32[8,338], index: 4, kind: output, shape index: {}]  }
   0x1   :  { %v65_v0 = vld [vmem:[%s516_s0 + $0x170] sm:$0xff]  ;;  %v64_v1 = vld [vmem:[%s516_s0 + $0x168] sm:$0xff]  ;;  %148 = vmatprep.subr.mxu1 %v285_v2  ;;  %v62_v3 = vld [vmem:[%s516_s0 + $0x158] sm:$0xff] }
   0x2   :  { %77 = vmatprep.subr.mxu0 %v65_v0  ;;  %v66_v4 = vld [vmem:[%s516_s0 + $0x178] sm:$0xff]  ;;  %v61_v5 = vld [vmem:[%s516_s0 + $0x150] sm:$0xff]  ;;  %v59_v6 = vld [vmem:[%s516_s0 + $0x140] sm:$0xff]  ;;  %v286_v0 = vmov 0  }
   0x3   :  { %78 = vmatpush1.msra.mxu0 %v64_v1  ;;  %149 = vmatpush1.msra.mxu1 %v66_v4  ;;  %v63_v7 = vld [vmem:[%s516_s0 + $0x160] sm:$0xff]  ;;  %v58_v8 = vld [vmem:[%s516_s0 + $0x138] sm:$0xff]  ;;  %v60_v9 = vld [vmem:[%s516_s0 + $0x148] sm:$0xff] }
   0x4   :  { %79 = vmatprep.subr.mxu0 %v62_v3  ;;  %150 = vmatprep.subr.mxu1 %v285_v2  ;;  %v56_v10 = vld [vmem:[%s516_s0 + $0x128] sm:$0xff]  ;;  %v55_v11 = vld [vmem:[%s516_s0 + $0x120] sm:$0xff]  ;;  %v57_v12 = vld [vmem:[%s516_s0 + $0x130] sm:$0xff] }
   0x5   :  { %80 = vmatpush1.msra.mxu0 %v61_v5  ;;  %151 = vmatpush1.msra.mxu1 %v63_v7  ;;  %v53_v13 = vld [vmem:[%s516_s0 + $0x110] sm:$0xff]  ;;  %v52_v14 = vld [vmem:[%s516_s0 + $0x108] sm:$0xff]  ;;  %v54_v15 = vld [vmem:[%s516_s0 + $0x118] sm:$0xff] }
   0x6   :  { %81 = vmatprep.subr.mxu0 %v59_v6  ;;  %152 = vmatprep.subr.mxu1 %v285_v2  ;;  %v50_v16 = vld [vmem:[%s516_s0 + $0xf8] sm:$0xff]  ;;  %v49_v17 = vld [vmem:[%s516_s0 + $0xf0] sm:$0xff]  ;;  %v51_v18 = vld [vmem:[%s516_s0 + $0x100] sm:$0xff] }
   0x7   :  { %82 = vmatpush1.msra.mxu0 %v58_v8  ;;  %153 = vmatpush1.msra.mxu1 %v60_v9  ;;  %v47_v19 = vld [vmem:[%s516_s0 + $0xe0] sm:$0xff]  ;;  %v46_v20 = vld [vmem:[%s516_s0 + $0xd8] sm:$0xff]  ;;  %v48_v21 = vld [vmem:[%s516_s0 + $0xe8] sm:$0xff] }
   0x8   :  { %83 = vmatprep.subr.mxu0 %v56_v10  ;;  %154 = vmatprep.subr.mxu1 %v285_v2  ;;  %v44_v22 = vld [vmem:[%s516_s0 + $0xc8] sm:$0xff]  ;;  %v43_v23 = vld [vmem:[%s516_s0 + $0xc0] sm:$0xff]  ;;  %v45_v24 = vld [vmem:[%s516_s0 + $0xd0] sm:$0xff] }
   0x9   :  { %84 = vmatpush1.msra.mxu0 %v55_v11  ;;  %155 = vmatpush1.msra.mxu1 %v57_v12  ;;  %v41_v25 = vld [vmem:[%s516_s0 + $0xb0] sm:$0xff]  ;;  %v40_v26 = vld [vmem:[%s516_s0 + $0xa8] sm:$0xff]  ;;  %v42_v27 = vld [vmem:[%s516_s0 + $0xb8] sm:$0xff] }
   0xa   :  { %85 = vmatprep.subr.mxu0 %v53_v13  ;;  %156 = vmatprep.subr.mxu1 %v285_v2  ;;  %v38_v28 = vld [vmem:[%s516_s0 + $0x98] sm:$0xff]  ;;  %v37_v29 = vld [vmem:[%s516_s0 + $0x90] sm:$0xff]  ;;  %v39_v30 = vld [vmem:[%s516_s0 + $0xa0] sm:$0xff] }
   0xb   :  { %86 = vmatpush1.msra.mxu0 %v52_v14  ;;  %157 = vmatpush1.msra.mxu1 %v54_v15  ;;  %v35_v31 = vld [vmem:[%s516_s0 + $0x80] sm:$0xff]  ;;  %v34_v32 = vld [vmem:[%s516_s0 + $0x78] sm:$0xff]  ;;  %v36_v33 = vld [vmem:[%s516_s0 + $0x88] sm:$0xff] }
   0xc   :  { %87 = vmatprep.subr.mxu0 %v50_v16  ;;  %158 = vmatprep.subr.mxu1 %v285_v2  ;;  %v32_v34 = vld [vmem:[%s516_s0 + $0x68] sm:$0xff]  ;;  %v31_v35 = vld [vmem:[%s516_s0 + $0x60] sm:$0xff]  ;;  %v33_v36 = vld [vmem:[%s516_s0 + $0x70] sm:$0xff] }
   0xd   :  { %88 = vmatpush1.msra.mxu0 %v49_v17  ;;  %159 = vmatpush1.msra.mxu1 %v51_v18  ;;  %v29_v37 = vld [vmem:[%s516_s0 + $0x50] sm:$0xff]  ;;  %v28_v38 = vld [vmem:[%s516_s0 + $0x48] sm:$0xff]  ;;  %v30_v39 = vld [vmem:[%s516_s0 + $0x58] sm:$0xff] }
   0xe   :  { %89 = vmatprep.subr.mxu0 %v47_v19  ;;  %160 = vmatprep.subr.mxu1 %v285_v2  ;;  %v26_v40 = vld [vmem:[%s516_s0 + $0x38] sm:$0xff]  ;;  %v25_v41 = vld [vmem:[%s516_s0 + $0x30] sm:$0xff]  ;;  %v27_v42 = vld [vmem:[%s516_s0 + $0x40] sm:$0xff] }
   0xf   :  { %90 = vmatpush1.msra.mxu0 %v46_v20  ;;  %161 = vmatpush1.msra.mxu1 %v48_v21  ;;  %v23_v43 = vld [vmem:[%s516_s0 + $0x20] sm:$0xff]  ;;  %v22_v44 = vld [vmem:[%s516_s0 + $0x18] sm:$0xff]  ;;  %v24_v45 = vld [vmem:[%s516_s0 + $0x28] sm:$0xff] }
  0x10   :  { %91 = vmatprep.subr.mxu0 %v44_v22  ;;  %162 = vmatprep.subr.mxu1 %v285_v2  ;;  %v20_v46 = vld [vmem:[%s516_s0 + $0x8] sm:$0xff]  ;;  %v19_v47 = vld [vmem:[%s516_s0] sm:$0xff]  ;;  %v21_v48 = vld [vmem:[%s516_s0 + $0x10] sm:$0xff] }
  0x11   :  { %92 = vmatpush1.msra.mxu0 %v43_v23  ;;  %163 = vmatpush1.msra.mxu1 %v45_v24  ;;  %v71_v49 = vld [vmem:[%s516_s0 + $0x1a0] sm:$0xff]  ;;  %v70_v50 = vld [vmem:[%s516_s0 + $0x198] sm:$0xff]  ;;  %v72_v51 = vld [vmem:[%s516_s0 + $0x1a8] sm:$0xff] }
  0x12   :  { %93 = vmatprep.subr.mxu0 %v41_v25  ;;  %164 = vmatprep.subr.mxu1 %v285_v2  ;;  %v68_v52 = vld [vmem:[%s516_s0 + $0x188] sm:$0xff]  ;;  %v67_v54 = vld [vmem:[%s516_s0 + $0x180] sm:$0xff]  ;;  %v69_v56 = vld [vmem:[%s516_s0 + $0x190] sm:$0xff] }
  0x13   :  { %94 = vmatpush1.msra.mxu0 %v40_v26  ;;  %165 = vmatpush1.msra.mxu1 %v42_v27  ;;  %v18_v53 = vld [vmem:[%s517_s1 + $0x8] sm:$0xff]  ;;  %v17_v55 = vld [vmem:[%s517_s1] sm:$0xff] }
  0x14   :  { %95 = vmatprep.subr.mxu0 %v38_v28  ;;  %166 = vmatprep.subr.mxu1 %v285_v2  ;;  %v243_v1 = vld [vmem:[%s518_s2] sm:$0xff] }
  0x15   :  { %96 = vmatpush1.msra.mxu0 %v37_v29  ;;  %167 = vmatpush1.msra.mxu1 %v39_v30 }
  0x16   :  { %97 = vmatprep.subr.mxu0 %v35_v31  ;;  %168 = vmatprep.subr.mxu1 %v285_v2 }
  0x17   :  { %98 = vmatpush1.msra.mxu0 %v34_v32  ;;  %169 = vmatpush1.msra.mxu1 %v36_v33 }
  0x18   :  { %99 = vmatprep.subr.mxu0 %v32_v34  ;;  %170 = vmatprep.subr.mxu1 %v285_v2 }
  0x19   :  { %100 = vmatpush1.msra.mxu0 %v31_v35  ;;  %171 = vmatpush1.msra.mxu1 %v33_v36 }
  0x1a   :  { %101 = vmatprep.subr.mxu0 %v29_v37  ;;  %172 = vmatprep.subr.mxu1 %v285_v2 }
  0x1b   :  { %102 = vmatpush1.msra.mxu0 %v28_v38  ;;  %173 = vmatpush1.msra.mxu1 %v30_v39 }
  0x1c   :  { %103 = vmatprep.subr.mxu0 %v26_v40  ;;  %174 = vmatprep.subr.mxu1 %v285_v2 }
  0x1d   :  { %104 = vmatpush1.msra.mxu0 %v25_v41  ;;  %175 = vmatpush1.msra.mxu1 %v27_v42 }
  0x1e   :  { %105 = vmatprep.subr.mxu0 %v23_v43  ;;  %176 = vmatprep.subr.mxu1 %v285_v2 }
  0x1f   :  { %106 = vmatpush1.msra.mxu0 %v22_v44  ;;  %177 = vmatpush1.msra.mxu1 %v24_v45 }
  0x20   :  { %107 = vmatprep.subr.mxu0 %v20_v46  ;;  %178 = vmatprep.subr.mxu1 %v285_v2 }
  0x21   :  { %108 = vmatpush1.msra.mxu0 %v19_v47  ;;  %179 = vmatpush1.msra.mxu1 %v21_v48 }
  0x22   :  { %137 = vmatprep.subr.mxu0 %v71_v49  ;;  %208 = vmatprep.subr.mxu1 %v285_v2 }
  0x23   :  { %138 = vmatpush2.msra.mxu0 %v70_v50  ;;  %209 = vmatpush2.msra.mxu1 %v72_v51 }
  0x24   :  { %139 = vmatprep.subr.mxu0 %v68_v52  ;;  %277 = vmatprep.mubr.msk.f32.mxu0 %vm73_vm0, %v18_v53 }
  0x25   :  { %140 = vmatpush2.msra.mxu0 %v67_v54  ;;  %210 = vmatprep.subr.mxu1 %v285_v2  ;;  %v252_v2 = vld [vmem:[%s519_s3] sm:$0xff] }
  0x26   :  { %142 = vmatmul.mubr.f32.vlgmr.msra.gmra.mxu0 %v17_v55  ;;  %211 = vmatpush2.msra.mxu1 %v69_v56 }
  0x27   :  { %278 = vmatprep.mubr.msk.f32.mxu1 %vm73_vm0, %v18_v53  ;;  %281 = vset.pattern.permute.xlu1 %v286_v0 }
  0x28   :  { %213 = vmatmul.mubr.f32.vlgmr.msra.gmra.mxu1 %v17_v55  ;;  %282 = vset.pattern.permute.xlu0 %v286_v0 }
  0x29   :  { %246 = vperm.xlu1 %281, %v243_v1  }
  0x2d   :  { %255 = vperm.xlu1 %281, %v252_v2  }
  0xa4   :  { %v247_v17 = vpop.permute.xlu1 %246 }
  0xa8   :  { %v256_v25 = vpop.permute.xlu1 %255 }
  0xe6   :  { %v143_v57 = vpop.f32.mrf.mxu0 }
  0xe8   :  { %v214_v58 = vpop.f32.mrf.mxu1  ;;  %v145_v59 = vpop.f32.mrf.mxu0 }
  0xe9   :  { %v218_v60 = vadd.f32 %v145_v59, %v143_v57  ;;  %v220_v61 = vsel %vm219_vm1, %v214_v58, 0.0 }
  0xea   :  { %v216_v62 = vpop.f32.mrf.mxu1 }
  0xeb   :  { %v221_v63 = vadd.f32 %v220_v61, %v218_v60 }
  0xed   :  { %222 = vadd.xlane.f32.xlu0 %v221_v63 }
 0x176   :  { %v223_v3 = vpop.xlane.xlu0 %222 }
 0x177   :  { %v225_v4 = vmul.f32 0.00295858, %v223_v3 }
 0x179   :  { %v226_v5 = vsub.f32 %v143_v57, %v225_v4  ;;  %v227_v6 = vsub.f32 %v145_v59, %v225_v4  ;;  %v228_v7 = vsub.f32 %v214_v58, %v225_v4 }
 0x17b   :  { %v229_v8 = vmul.f32 %v226_v5, %v226_v5  ;;  %v230_v9 = vmul.f32 %v227_v6, %v227_v6  ;;  %v231_v10 = vmul.f32 %v228_v7, %v228_v7 }
 0x17d   :  { %v232_v11 = vadd.f32 %v230_v9, %v229_v8  ;;  %v233_v12 = vsel %vm219_vm1, %v231_v10, 0.0 }
 0x17f   :  { %v234_v13 = vadd.f32 %v233_v12, %v232_v11 }
 0x181   :  { %235 = vadd.xlane.f32.xlu0 %v234_v13 }
 0x20a   :  { %v236_v14 = vpop.xlane.xlu0 %235 }
 0x20b   :  { %v237_v15 = vmul.f32 0.00295858, %v236_v14 }
 0x20d   :  { %v238_v16 = vadd.f32 1e-05, %v237_v15 }
 0x20f   :  { %283 = vrsqrt.f32 %v238_v16 }
 0x21c   :  { %v284_v18 = vpop.eup %283 }
 0x21d   :  { %v240_v19 = vmul.f32 %v284_v18, %v226_v5  ;;  %v241_v20 = vmul.f32 %v284_v18, %v227_v6  ;;  %v242_v21 = vmul.f32 %v284_v18, %v228_v7 }
 0x21f   :  { %v249_v22 = vmul.f32 %v247_v17, %v240_v19  ;;  %v250_v23 = vmul.f32 %v247_v17, %v241_v20  ;;  %v251_v24 = vmul.f32 %v247_v17, %v242_v21 }
 0x221   :  { %v258_v26 = vadd.f32 %v256_v25, %v249_v22  ;;  %v259_v27 = vadd.f32 %v256_v25, %v250_v23  ;;  %v260_v28 = vadd.f32 %v256_v25, %v251_v24 }
 0x223   :  { %vm261_vm2 = vcmp.gt.f32.partialorder %v258_v26, 0.0  ;;  %vm262_vm3 = vcmp.gt.f32.partialorder %v259_v27, 0.0  ;;  %vm263_vm4 = vcmp.gt.f32.partialorder %v260_v28, 0.0  ;;  %v264_v29 = vmul.f32 0.2, %v258_v26 }
 0x224   :  { %v265_v30 = vmul.f32 0.2, %v259_v27  ;;  %v266_v31 = vmul.f32 0.2, %v260_v28 }
 0x225   :  { %v267_v32 = vsel %vm261_vm2, %v258_v26, %v264_v29 }
 0x226   :  { %v268_v33 = vsel %vm262_vm3, %v259_v27, %v265_v30  ;;  %v269_v34 = vsel %vm263_vm4, %v260_v28, %v266_v31  ;;  %270 = vst [vmem:[%s520_s4] sm:$0xff] %v267_v32 }
 0x227   :  { %271 = vst [vmem:[%s520_s4 + $0x8] sm:$0xff] %v268_v33  ;;  %272 = vst.msk [vmem:[%s520_s4 + $0x10] sm:$0xff] %vm219_vm1, %v269_v34 }

// kernel: generator_forward.8
= control target key start
LH: loop header
LB: loop body
LE: loop exit
PB: predicated region body
PF: predicated region fallthrough
CT: control target
= control target key end

     0   :  { %v614_v3 = vmov 0.0   ;;  %vm108_vm0 = vcmask 588800   ;;  %vm475_vm1 = vcmask 801792   ;;  %s980_s0 = inlined_call_operand.vmem [shape: f32[72,1250], index: 0, kind: input, shape index: {}]   ;;  %s981_s1 = inlined_call_operand.vmem [shape: f32[8,72], index: 1, kind: input, shape index: {}]   ;;  %s982_s2 = inlined_call_operand.vmem [shape: f32[8,1], index: 2, kind: input, shape index: {}]   ;;  %s983_s3 = inlined_call_operand.vmem [shape: f32[8,1], index: 3, kind: input, shape index: {}]   ;;  %s984_s4 = inlined_call_operand.vmem [shape: f32[8,1250], index: 4, kind: output, shape index: {}]  }
   0x1   :  { %v99_v0 = vld [vmem:[%s980_s0 + $0x288] sm:$0xff]  ;;  %v98_v1 = vld [vmem:[%s980_s0 + $0x280] sm:$0xff]  ;;  %v89_v2 = vld [vmem:[%s980_s0 + $0x238] sm:$0xff]  ;;  %176 = vmatprep.mubr.f32.mxu0 %v614_v3  ;;  %247 = vmatprep.mubr.f32.mxu1 %v614_v3 }
   0x2   :  { %126 = vmatprep.subr.mxu0 %v99_v0  ;;  %v88_v4 = vld [vmem:[%s980_s0 + $0x230] sm:$0xff]  ;;  %v101_v5 = vld [vmem:[%s980_s0 + $0x298] sm:$0xff]  ;;  %v79_v6 = vld [vmem:[%s980_s0 + $0x1e8] sm:$0xff] }
   0x3   :  { %127 = vmatpush1.msra.mxu0 %v98_v1  ;;  %197 = vmatprep.subr.mxu1 %v101_v5  ;;  %v100_v7 = vld [vmem:[%s980_s0 + $0x290] sm:$0xff]  ;;  %v78_v8 = vld [vmem:[%s980_s0 + $0x1e0] sm:$0xff]  ;;  %v91_v9 = vld [vmem:[%s980_s0 + $0x248] sm:$0xff] }
   0x4   :  { %128 = vmatprep.subr.mxu0 %v89_v2  ;;  %198 = vmatpush1.msra.mxu1 %v100_v7  ;;  %v90_v10 = vld [vmem:[%s980_s0 + $0x240] sm:$0xff]  ;;  %v69_v11 = vld [vmem:[%s980_s0 + $0x198] sm:$0xff]  ;;  %v68_v13 = vld [vmem:[%s980_s0 + $0x190] sm:$0xff] }
   0x5   :  { %129 = vmatpush1.msra.mxu0 %v88_v4  ;;  %199 = vmatprep.subr.mxu1 %v91_v9  ;;  %v81_v12 = vld [vmem:[%s980_s0 + $0x1f8] sm:$0xff]  ;;  %v80_v14 = vld [vmem:[%s980_s0 + $0x1f0] sm:$0xff]  ;;  %v71_v15 = vld [vmem:[%s980_s0 + $0x1a8] sm:$0xff] }
   0x6   :  { %130 = vmatprep.subr.mxu0 %v79_v6  ;;  %200 = vmatpush1.msra.mxu1 %v90_v10  ;;  %v59_v16 = vld [vmem:[%s980_s0 + $0x148] sm:$0xff]  ;;  %v70_v17 = vld [vmem:[%s980_s0 + $0x1a0] sm:$0xff]  ;;  %v61_v19 = vld [vmem:[%s980_s0 + $0x158] sm:$0xff] }
   0x7   :  { %131 = vmatpush1.msra.mxu0 %v78_v8  ;;  %201 = vmatprep.subr.mxu1 %v81_v12  ;;  %v58_v18 = vld [vmem:[%s980_s0 + $0x140] sm:$0xff]  ;;  %v49_v20 = vld [vmem:[%s980_s0 + $0xf8] sm:$0xff]  ;;  %v60_v21 = vld [vmem:[%s980_s0 + $0x150] sm:$0xff] }
   0x8   :  { %132 = vmatprep.subr.mxu0 %v69_v11  ;;  %202 = vmatpush1.msra.mxu1 %v80_v14  ;;  %v48_v22 = vld [vmem:[%s980_s0 + $0xf0] sm:$0xff]  ;;  %v51_v23 = vld [vmem:[%s980_s0 + $0x108] sm:$0xff]  ;;  %v50_v25 = vld [vmem:[%s980_s0 + $0x100] sm:$0xff] }
   0x9   :  { %133 = vmatpush1.msra.mxu0 %v68_v13  ;;  %203 = vmatprep.subr.mxu1 %v71_v15  ;;  %v39_v24 = vld [vmem:[%s980_s0 + $0xa8] sm:$0xff]  ;;  %v38_v26 = vld [vmem:[%s980_s0 + $0xa0] sm:$0xff]  ;;  %v41_v27 = vld [vmem:[%s980_s0 + $0xb8] sm:$0xff] }
   0xa   :  { %134 = vmatprep.subr.mxu0 %v59_v16  ;;  %204 = vmatpush1.msra.mxu1 %v70_v17  ;;  %v29_v28 = vld [vmem:[%s980_s0 + $0x58] sm:$0xff]  ;;  %v40_v29 = vld [vmem:[%s980_s0 + $0xb0] sm:$0xff]  ;;  %v31_v31 = vld [vmem:[%s980_s0 + $0x68] sm:$0xff] }
   0xb   :  { %135 = vmatpush1.msra.mxu0 %v58_v18  ;;  %205 = vmatprep.subr.mxu1 %v61_v19  ;;  %v28_v30 = vld [vmem:[%s980_s0 + $0x50] sm:$0xff]  ;;  %v19_v32 = vld [vmem:[%s980_s0 + $0x8] sm:$0xff]  ;;  %v30_v33 = vld [vmem:[%s980_s0 + $0x60] sm:$0xff] }
   0xc   :  { %136 = vmatprep.subr.mxu0 %v49_v20  ;;  %206 = vmatpush1.msra.mxu1 %v60_v21  ;;  %v18_v34 = vld [vmem:[%s980_s0] sm:$0xff]  ;;  %v21_v35 = vld [vmem:[%s980_s0 + $0x18] sm:$0xff]  ;;  %v103_v37 = vld [vmem:[%s980_s0 + $0x2a8] sm:$0xff] }
   0xd   :  { %137 = vmatpush1.msra.mxu0 %v48_v22  ;;  %207 = vmatprep.subr.mxu1 %v51_v23  ;;  %v751_v36 = vld [vmem:[%s981_s1] sm:$0xff]  ;;  %v20_v39 = vld [vmem:[%s980_s0 + $0x10] sm:$0xff]  ;;  %v93_v40 = vld [vmem:[%s980_s0 + $0x258] sm:$0xff] }
   0xe   :  { %138 = vmatprep.subr.mxu0 %v39_v24  ;;  %208 = vmatpush1.msra.mxu1 %v50_v25  ;;  %v102_v38 = vld [vmem:[%s980_s0 + $0x2a0] sm:$0xff]  ;;  %v92_v41 = vld [vmem:[%s980_s0 + $0x250] sm:$0xff]  ;;  %v105_v42 = vld [vmem:[%s980_s0 + $0x2b8] sm:$0xff] }
   0xf   :  { %139 = vmatpush1.msra.mxu0 %v38_v26  ;;  %209 = vmatprep.subr.mxu1 %v41_v27  ;;  %v83_v43 = vld [vmem:[%s980_s0 + $0x208] sm:$0xff]  ;;  %v104_v44 = vld [vmem:[%s980_s0 + $0x2b0] sm:$0xff]  ;;  %v82_v45 = vld [vmem:[%s980_s0 + $0x200] sm:$0xff] }
  0x10   :  { %140 = vmatprep.subr.mxu0 %v29_v28  ;;  %210 = vmatpush1.msra.mxu1 %v40_v29  ;;  %v95_v46 = vld [vmem:[%s980_s0 + $0x268] sm:$0xff]  ;;  %v73_v47 = vld [vmem:[%s980_s0 + $0x1b8] sm:$0xff]  ;;  %v94_v48 = vld [vmem:[%s980_s0 + $0x260] sm:$0xff] }
  0x11   :  { %141 = vmatpush1.msra.mxu0 %v28_v30  ;;  %211 = vmatprep.subr.mxu1 %v31_v31  ;;  %v72_v49 = vld [vmem:[%s980_s0 + $0x1b0] sm:$0xff]  ;;  %v85_v50 = vld [vmem:[%s980_s0 + $0x218] sm:$0xff]  ;;  %v63_v51 = vld [vmem:[%s980_s0 + $0x168] sm:$0xff] }
  0x12   :  { %142 = vmatprep.subr.mxu0 %v19_v32  ;;  %212 = vmatpush1.msra.mxu1 %v30_v33  ;;  %v84_v52 = vld [vmem:[%s980_s0 + $0x210] sm:$0xff]  ;;  %v62_v53 = vld [vmem:[%s980_s0 + $0x160] sm:$0xff]  ;;  %v75_v54 = vld [vmem:[%s980_s0 + $0x1c8] sm:$0xff] }
  0x13   :  { %143 = vmatpush1.msra.mxu0 %v18_v34  ;;  %213 = vmatprep.subr.mxu1 %v21_v35  ;;  %v53_v55 = vld [vmem:[%s980_s0 + $0x118] sm:$0xff]  ;;  %v74_v56 = vld [vmem:[%s980_s0 + $0x1c0] sm:$0xff]  ;;  %v52_v57 = vld [vmem:[%s980_s0 + $0x110] sm:$0xff] }
  0x14   :  { %603 = vmatmul.mubr.msk.f32.vlgmr.msra.gmra.mxu0 %vm108_vm0, %v751_v36  ;;  %268 = vmatprep.subr.mxu0 %v103_v37  ;;  %v65_v58 = vld [vmem:[%s980_s0 + $0x178] sm:$0xff]  ;;  %v43_v59 = vld [vmem:[%s980_s0 + $0xc8] sm:$0xff]  ;;  %v64_v60 = vld [vmem:[%s980_s0 + $0x170] sm:$0xff] }
  0x15   :  { %269 = vmatpush1.msra.mxu0 %v102_v38  ;;  %214 = vmatpush1.msra.mxu1 %v20_v39  ;;  %v42_v61 = vld [vmem:[%s980_s0 + $0xc0] sm:$0xff]  ;;  %v55_v62 = vld [vmem:[%s980_s0 + $0x128] sm:$0xff]  ;;  %v33_v63 = vld [vmem:[%s980_s0 + $0x78] sm:$0xff] }
  0x16   :  { %270 = vmatprep.subr.mxu0 %v93_v40  ;;  %604 = vmatmul.mubr.msk.f32.vlgmr.msra.gmra.mxu1 %vm108_vm0, %v751_v36  ;;  %v54_v0 = vld [vmem:[%s980_s0 + $0x120] sm:$0xff]  ;;  %v32_v1 = vld [vmem:[%s980_s0 + $0x70] sm:$0xff]  ;;  %v45_v2 = vld [vmem:[%s980_s0 + $0xd8] sm:$0xff] }
  0x17   :  { %271 = vmatpush1.msra.mxu0 %v92_v41  ;;  %339 = vmatprep.subr.mxu1 %v105_v42  ;;  %v23_v4 = vld [vmem:[%s980_s0 + $0x28] sm:$0xff]  ;;  %v22_v5 = vld [vmem:[%s980_s0 + $0x20] sm:$0xff]  ;;  %v44_v6 = vld [vmem:[%s980_s0 + $0xd0] sm:$0xff] }
  0x18   :  { %272 = vmatprep.subr.mxu0 %v83_v43  ;;  %340 = vmatpush1.msra.mxu1 %v104_v44  ;;  %v35_v7 = vld [vmem:[%s980_s0 + $0x88] sm:$0xff]  ;;  %v34_v9 = vld [vmem:[%s980_s0 + $0x80] sm:$0xff]  ;;  %v25_v11 = vld [vmem:[%s980_s0 + $0x38] sm:$0xff] }
  0x19   :  { %273 = vmatpush1.msra.mxu0 %v82_v45  ;;  %341 = vmatprep.subr.mxu1 %v95_v46  ;;  %v107_v8 = vld [vmem:[%s980_s0 + $0x2c8] sm:$0xff]  ;;  %v106_v10 = vld [vmem:[%s980_s0 + $0x2c0] sm:$0xff]  ;;  %v97_v12 = vld [vmem:[%s980_s0 + $0x278] sm:$0xff] }
  0x1a   :  { %274 = vmatprep.subr.mxu0 %v73_v47  ;;  %342 = vmatpush1.msra.mxu1 %v94_v48  ;;  %v24_v13 = vld [vmem:[%s980_s0 + $0x30] sm:$0xff]  ;;  %v87_v15 = vld [vmem:[%s980_s0 + $0x228] sm:$0xff]  ;;  %v86_v16 = vld [vmem:[%s980_s0 + $0x220] sm:$0xff]  ;;  %v615_v48 = vmov 0  }
  0x1b   :  { %275 = vmatpush1.msra.mxu0 %v72_v49  ;;  %343 = vmatprep.subr.mxu1 %v85_v50  ;;  %v96_v14 = vld [vmem:[%s980_s0 + $0x270] sm:$0xff]  ;;  %v77_v17 = vld [vmem:[%s980_s0 + $0x1d8] sm:$0xff]  ;;  %v67_v19 = vld [vmem:[%s980_s0 + $0x188] sm:$0xff] }
  0x1c   :  { %276 = vmatprep.subr.mxu0 %v63_v51  ;;  %344 = vmatpush1.msra.mxu1 %v84_v52  ;;  %v76_v18 = vld [vmem:[%s980_s0 + $0x1d0] sm:$0xff]  ;;  %v66_v20 = vld [vmem:[%s980_s0 + $0x180] sm:$0xff]  ;;  %v57_v21 = vld [vmem:[%s980_s0 + $0x138] sm:$0xff] }
  0x1d   :  { %277 = vmatpush1.msra.mxu0 %v62_v53  ;;  %345 = vmatprep.subr.mxu1 %v75_v54  ;;  %v56_v22 = vld [vmem:[%s980_s0 + $0x130] sm:$0xff]  ;;  %v46_v23 = vld [vmem:[%s980_s0 + $0xe0] sm:$0xff]  ;;  %v37_v24 = vld [vmem:[%s980_s0 + $0x98] sm:$0xff] }
  0x1e   :  { %278 = vmatprep.subr.mxu0 %v53_v55  ;;  %346 = vmatpush1.msra.mxu1 %v74_v56  ;;  %v36_v25 = vld [vmem:[%s980_s0 + $0x90] sm:$0xff]  ;;  %v27_v26 = vld [vmem:[%s980_s0 + $0x48] sm:$0xff]  ;;  %v26_v27 = vld [vmem:[%s980_s0 + $0x40] sm:$0xff] }
  0x1f   :  { %279 = vmatpush1.msra.mxu0 %v52_v57  ;;  %347 = vmatprep.subr.mxu1 %v65_v58  ;;  %v527_v49 = vld [vmem:[%s982_s2] sm:$0xff] }
  0x20   :  { %280 = vmatprep.subr.mxu0 %v43_v59  ;;  %348 = vmatpush1.msra.mxu1 %v64_v60  ;;  %v543_v50 = vld [vmem:[%s983_s3] sm:$0xff] }
  0x21   :  { %281 = vmatpush1.msra.mxu0 %v42_v61  ;;  %349 = vmatprep.subr.mxu1 %v55_v62 }
  0x22   :  { %282 = vmatprep.subr.mxu0 %v33_v63  ;;  %350 = vmatpush1.msra.mxu1 %v54_v0 }
  0x23   :  { %283 = vmatpush1.msra.mxu0 %v32_v1  ;;  %351 = vmatprep.subr.mxu1 %v45_v2 }
  0x24   :  { %284 = vmatprep.subr.mxu0 %v23_v4  ;;  %318 = vmatprep.mubr.f32.mxu0 %v614_v3 }
  0x25   :  { %285 = vmatpush1.msra.mxu0 %v22_v5  ;;  %352 = vmatpush1.msra.mxu1 %v44_v6 }
  0x26   :  { %605 = vmatmul.mubr.msk.f32.vlgmr.msra.gmra.mxu0 %vm108_vm0, %v751_v36  ;;  %353 = vmatprep.subr.mxu1 %v35_v7 }
  0x27   :  { %410 = vmatprep.subr.mxu0 %v107_v8  ;;  %354 = vmatpush1.msra.mxu1 %v34_v9 }
  0x28   :  { %411 = vmatpush1.msra.mxu0 %v106_v10  ;;  %355 = vmatprep.subr.mxu1 %v25_v11 }
  0x29   :  { %412 = vmatprep.subr.mxu0 %v97_v12  ;;  %356 = vmatpush1.msra.mxu1 %v24_v13 }
  0x2a   :  { %389 = vmatprep.mubr.f32.mxu1 %v614_v3  ;;  %413 = vmatpush1.msra.mxu0 %v96_v14 }
  0x2b   :  { %606 = vmatmul.mubr.msk.f32.vlgmr.msra.gmra.mxu1 %vm108_vm0, %v751_v36  ;;  %414 = vmatprep.subr.mxu0 %v87_v15 }
  0x2c   :  { %415 = vmatpush1.msra.mxu0 %v86_v16  ;;  %460 = vmatprep.mubr.f32.mxu0 %v614_v3  ;;  %v47_v3 = vld [vmem:[%s980_s0 + $0xe8] sm:$0xff] }
  0x2d   :  { %416 = vmatprep.subr.mxu0 %v77_v17  ;;  %610 = vset.pattern.permute.xlu1 %v615_v48 }
  0x2e   :  { %417 = vmatpush1.msra.mxu0 %v76_v18  ;;  %611 = vset.pattern.permute.xlu0 %v615_v48 }
  0x2f   :  { %418 = vmatprep.subr.mxu0 %v67_v19  ;;  %530 = vperm.xlu1 %610, %v527_v49  }
  0x30   :  { %419 = vmatpush1.msra.mxu0 %v66_v20 }
  0x31   :  { %420 = vmatprep.subr.mxu0 %v57_v21 }
  0x32   :  { %421 = vmatpush1.msra.mxu0 %v56_v22 }
  0x33   :  { %422 = vmatprep.subr.mxu0 %v47_v3  ;;  %546 = vperm.xlu1 %610, %v543_v50  }
  0x34   :  { %423 = vmatpush1.msra.mxu0 %v46_v23 }
  0x35   :  { %424 = vmatprep.subr.mxu0 %v37_v24 }
  0x36   :  { %425 = vmatpush1.msra.mxu0 %v36_v25 }
  0x37   :  { %426 = vmatprep.subr.mxu0 %v27_v26 }
  0x38   :  { %427 = vmatpush1.msra.mxu0 %v26_v27 }
  0x39   :  { %607 = vmatmul.mubr.msk.f32.vlgmr.msra.gmra.mxu0 %vm108_vm0, %v751_v36 }
  0xaa   :  { %v531_v3 = vpop.permute.xlu1 %530 }
  0xd4   :  { %v178_v28 = vpop.f32.mrf.mxu0 }
  0xd6   :  { %v180_v29 = vpop.f32.mrf.mxu0  ;;  %v249_v31 = vpop.f32.mrf.mxu1 }
  0xd7   :  { %v467_v30 = vadd.f32 %v180_v29, %v178_v28 }
  0xd8   :  { %v251_v33 = vpop.f32.mrf.mxu1 }
  0xd9   :  { %v468_v32 = vadd.f32 %v467_v30, %v249_v31 }
  0xdb   :  { %v469_v35 = vadd.f32 %v468_v32, %v251_v33 }
  0xe6   :  { %v320_v34 = vpop.f32.mrf.mxu0 }
  0xe7   :  { %v470_v37 = vadd.f32 %v469_v35, %v320_v34 }
  0xe8   :  { %v322_v38 = vpop.f32.mrf.mxu0 }
  0xe9   :  { %v471_v39 = vadd.f32 %v470_v37, %v322_v38 }
  0xeb   :  { %v391_v40 = vpop.f32.mrf.mxu1 }
  0xec   :  { %v472_v41 = vadd.f32 %v471_v39, %v391_v40 }
  0xed   :  { %v393_v42 = vpop.f32.mrf.mxu1 }
  0xee   :  { %v473_v43 = vadd.f32 %v472_v41, %v393_v42  ;;  %v547_v41 = vpop.permute.xlu1 %546 }
  0xf9   :  { %v462_v44 = vpop.f32.mrf.mxu0 }
  0xfa   :  { %v474_v45 = vadd.f32 %v473_v43, %v462_v44 }
  0xfb   :  { %v464_v46 = vpop.f32.mrf.mxu0 }
  0xfc   :  { %v476_v36 = vsel %vm475_vm1, %v464_v46, 0.0 }
  0xfd   :  { %v477_v47 = vadd.f32 %v476_v36, %v474_v45 }
  0xff   :  { %478 = vadd.xlane.f32.xlu0 %v477_v47 }
 0x188   :  { %v479_v51 = vpop.xlane.xlu0 %478 }
 0x189   :  { %v481_v52 = vmul.f32 0.0008, %v479_v51 }
 0x18b   :  { %v482_v53 = vsub.f32 %v178_v28, %v481_v52  ;;  %v483_v54 = vsub.f32 %v180_v29, %v481_v52  ;;  %v484_v55 = vsub.f32 %v249_v31, %v481_v52  ;;  %v485_v58 = vsub.f32 %v251_v33, %v481_v52 }
 0x18c   :  { %v486_v59 = vsub.f32 %v320_v34, %v481_v52  ;;  %v487_v62 = vsub.f32 %v322_v38, %v481_v52  ;;  %v488_v1 = vsub.f32 %v391_v40, %v481_v52  ;;  %v489_v5 = vsub.f32 %v393_v42, %v481_v52 }
 0x18d   :  { %v492_v56 = vmul.f32 %v482_v53, %v482_v53  ;;  %v493_v57 = vmul.f32 %v483_v54, %v483_v54  ;;  %v494_v60 = vmul.f32 %v484_v55, %v484_v55  ;;  %v495_v63 = vmul.f32 %v485_v58, %v485_v58 }
 0x18e   :  { %v496_v2 = vmul.f32 %v486_v59, %v486_v59  ;;  %v497_v6 = vmul.f32 %v487_v62, %v487_v62  ;;  %v491_v8 = vsub.f32 %v464_v46, %v481_v52  ;;  %v490_v9 = vsub.f32 %v462_v44, %v481_v52 }
 0x18f   :  { %v502_v61 = vadd.f32 %v493_v57, %v492_v56  ;;  %v498_v10 = vmul.f32 %v488_v1, %v488_v1  ;;  %v499_v12 = vmul.f32 %v489_v5, %v489_v5 }
 0x190   :  { %v501_v14 = vmul.f32 %v491_v8, %v491_v8  ;;  %v500_v15 = vmul.f32 %v490_v9, %v490_v9 }
 0x191   :  { %v503_v0 = vadd.f32 %v502_v61, %v494_v60 }
 0x192   :  { %v510_v18 = vsel %vm475_vm1, %v501_v14, 0.0 }
 0x193   :  { %v504_v4 = vadd.f32 %v503_v0, %v495_v63 }
 0x195   :  { %v505_v7 = vadd.f32 %v504_v4, %v496_v2 }
 0x197   :  { %v506_v11 = vadd.f32 %v505_v7, %v497_v6 }
 0x199   :  { %v507_v13 = vadd.f32 %v506_v11, %v498_v10 }
 0x19b   :  { %v508_v16 = vadd.f32 %v507_v13, %v499_v12 }
 0x19d   :  { %v509_v17 = vadd.f32 %v508_v16, %v500_v15 }
 0x19f   :  { %v511_v19 = vadd.f32 %v510_v18, %v509_v17 }
 0x1a1   :  { %512 = vadd.xlane.f32.xlu0 %v511_v19 }
 0x22a   :  { %v513_v20 = vpop.xlane.xlu0 %512 }
 0x22b   :  { %v514_v21 = vmul.f32 0.0008, %v513_v20 }
 0x22d   :  { %v515_v22 = vadd.f32 1e-05, %v514_v21 }
 0x22f   :  { %612 = vrsqrt.f32 %v515_v22 }
 0x23c   :  { %v613_v23 = vpop.eup %612 }
 0x23d   :  { %v517_v24 = vmul.f32 %v613_v23, %v482_v53  ;;  %v518_v25 = vmul.f32 %v613_v23, %v483_v54  ;;  %v519_v26 = vmul.f32 %v613_v23, %v484_v55  ;;  %v520_v27 = vmul.f32 %v613_v23, %v485_v58 }
 0x23e   :  { %v521_v28 = vmul.f32 %v613_v23, %v486_v59  ;;  %v522_v29 = vmul.f32 %v613_v23, %v487_v62  ;;  %v523_v30 = vmul.f32 %v613_v23, %v488_v1  ;;  %v524_v31 = vmul.f32 %v613_v23, %v489_v5 }
 0x23f   :  { %v525_v32 = vmul.f32 %v613_v23, %v490_v9  ;;  %v526_v33 = vmul.f32 %v613_v23, %v491_v8  ;;  %v533_v34 = vmul.f32 %v531_v3, %v517_v24  ;;  %v534_v35 = vmul.f32 %v531_v3, %v518_v25 }
 0x240   :  { %v535_v37 = vmul.f32 %v531_v3, %v519_v26  ;;  %v536_v38 = vmul.f32 %v531_v3, %v520_v27  ;;  %v537_v39 = vmul.f32 %v531_v3, %v521_v28  ;;  %v538_v40 = vmul.f32 %v531_v3, %v522_v29 }
 0x241   :  { %v539_v42 = vmul.f32 %v531_v3, %v523_v30  ;;  %v540_v43 = vmul.f32 %v531_v3, %v524_v31  ;;  %v541_v44 = vmul.f32 %v531_v3, %v525_v32  ;;  %v542_v45 = vmul.f32 %v531_v3, %v526_v33 }
 0x242   :  { %v549_v46 = vadd.f32 %v547_v41, %v533_v34  ;;  %v550_v36 = vadd.f32 %v547_v41, %v534_v35  ;;  %v551_v47 = vadd.f32 %v547_v41, %v535_v37  ;;  %v552_v48 = vadd.f32 %v547_v41, %v536_v38 }
 0x243   :  { %v553_v49 = vadd.f32 %v547_v41, %v537_v39  ;;  %v554_v50 = vadd.f32 %v547_v41, %v538_v40  ;;  %v555_v51 = vadd.f32 %v547_v41, %v539_v42  ;;  %v556_v52 = vadd.f32 %v547_v41, %v540_v43 }
 0x244   :  { %v557_v53 = vadd.f32 %v547_v41, %v541_v44  ;;  %v558_v54 = vadd.f32 %v547_v41, %v542_v45  ;;  %vm559_vm2 = vcmp.gt.f32.partialorder %v549_v46, 0.0  ;;  %vm560_vm3 = vcmp.gt.f32.partialorder %v550_v36, 0.0 }
 0x245   :  { %vm561_vm4 = vcmp.gt.f32.partialorder %v551_v47, 0.0  ;;  %vm562_vm5 = vcmp.gt.f32.partialorder %v552_v48, 0.0  ;;  %vm563_vm6 = vcmp.gt.f32.partialorder %v553_v49, 0.0  ;;  %vm564_vm7 = vcmp.gt.f32.partialorder %v554_v50, 0.0 }
 0x246   :  { %vm565_vm8 = vcmp.gt.f32.partialorder %v555_v51, 0.0  ;;  %vm566_vm9 = vcmp.gt.f32.partialorder %v556_v52, 0.0  ;;  %vm567_vm10 = vcmp.gt.f32.partialorder %v557_v53, 0.0  ;;  %vm568_vm11 = vcmp.gt.f32.partialorder %v558_v54, 0.0 }
 0x247   :  { %v569_v55 = vmul.f32 0.2, %v549_v46  ;;  %v570_v56 = vmul.f32 0.2, %v550_v36  ;;  %v571_v57 = vmul.f32 0.2, %v551_v47 }
 0x248   :  { %v572_v58 = vmul.f32 0.2, %v552_v48  ;;  %v573_v59 = vmul.f32 0.2, %v553_v49  ;;  %v574_v60 = vmul.f32 0.2, %v554_v50 }
 0x249   :  { %v575_v61 = vmul.f32 0.2, %v555_v51  ;;  %v576_v62 = vmul.f32 0.2, %v556_v52  ;;  %v577_v63 = vmul.f32 0.2, %v557_v53  ;;  %v579_v0 = vsel %vm559_vm2, %v549_v46, %v569_v55 }
 0x24a   :  { %v578_v1 = vmul.f32 0.2, %v558_v54  ;;  %v580_v2 = vsel %vm560_vm3, %v550_v36, %v570_v56  ;;  %v581_v4 = vsel %vm561_vm4, %v551_v47, %v571_v57  ;;  %v582_v5 = vsel %vm562_vm5, %v552_v48, %v572_v58  ;;  %589 = vst [vmem:[%s984_s4] sm:$0xff] %v579_v0 }
 0x24b   :  { %v583_v6 = vsel %vm563_vm6, %v553_v49, %v573_v59  ;;  %v584_v7 = vsel %vm564_vm7, %v554_v50, %v574_v60  ;;  %v585_v8 = vsel %vm565_vm8, %v555_v51, %v575_v61  ;;  %v586_v9 = vsel %vm566_vm9, %v556_v52, %v576_v62  ;;  %590 = vst [vmem:[%s984_s4 + $0x8] sm:$0xff] %v580_v2 }
 0x24c   :  { %591 = vst [vmem:[%s984_s4 + $0x10] sm:$0xff] %v581_v4  ;;  %592 = vst [vmem:[%s984_s4 + $0x18] sm:$0xff] %v582_v5  ;;  %v587_v10 = vsel %vm567_vm10, %v557_v53, %v577_v63  ;;  %v588_v11 = vsel %vm568_vm11, %v558_v54, %v578_v1 }
 0x24d   :  { %593 = vst [vmem:[%s984_s4 + $0x20] sm:$0xff] %v583_v6  ;;  %594 = vst [vmem:[%s984_s4 + $0x28] sm:$0xff] %v584_v7 }
 0x24e   :  { %595 = vst [vmem:[%s984_s4 + $0x30] sm:$0xff] %v585_v8  ;;  %596 = vst [vmem:[%s984_s4 + $0x38] sm:$0xff] %v586_v9 }
 0x24f   :  { %597 = vst [vmem:[%s984_s4 + $0x40] sm:$0xff] %v587_v10  ;;  %598 = vst.msk [vmem:[%s984_s4 + $0x48] sm:$0xff] %vm475_vm1, %v588_v11 }

// kernel: generator_forward.9
= control target key start
LH: loop header
LB: loop body
LE: loop exit
PB: predicated region body
PF: predicated region fallthrough
CT: control target
= control target key end

     0   :  { %v923_v3 = vmov 0.0   ;;  %vm924_vm0 = vmmov 0   ;;  %s1606_s0 = inlined_call_operand.vmem [shape: f32[128,1568], index: 0, kind: input, shape index: {}]   ;;  %s1607_s1 = inlined_call_operand.vmem [shape: f32[1,128], index: 1, kind: input, shape index: {}]   ;;  %s1608_s2 = inlined_call_operand.vmem [shape: f32[1,1568], index: 2, kind: output, shape index: {}]  }
   0x1   :  { %v208_v0 = vld [vmem:[%s1606_s0 + $0x620] sm:$0xff]  ;;  %v210_v1 = vld [vmem:[%s1606_s0 + $0x630] sm:$0xff]  ;;  %v207_v2 = vld [vmem:[%s1606_s0 + $0x618] sm:$0xff]  ;;  %284 = vmatprep.mubr.f32.mxu0 %v923_v3  ;;  %355 = vmatprep.mubr.f32.mxu1 %v923_v3 }
   0x2   :  { %220 = vmatprep.subr.mxu0 %v208_v0  ;;  %291 = vmatprep.subr.mxu1 %v210_v1  ;;  %v209_v4 = vld [vmem:[%s1606_s0 + $0x628] sm:$0xff]  ;;  %v195_v5 = vld [vmem:[%s1606_s0 + $0x5b8] sm:$0xff]  ;;  %v194_v7 = vld [vmem:[%s1606_s0 + $0x5b0] sm:$0xff] }
   0x3   :  { %v197_v6 = vld [vmem:[%s1606_s0 + $0x5c8] sm:$0xff]  ;;  %221 = vmatpush1.msra.mxu0 %v207_v2  ;;  %292 = vmatpush1.msra.mxu1 %v209_v4  ;;  %v196_v8 = vld [vmem:[%s1606_s0 + $0x5c0] sm:$0xff]  ;;  %v182_v9 = vld [vmem:[%s1606_s0 + $0x550] sm:$0xff] }
   0x4   :  { %222 = vmatprep.subr.mxu0 %v195_v5  ;;  %293 = vmatprep.subr.mxu1 %v197_v6  ;;  %v184_v10 = vld [vmem:[%s1606_s0 + $0x560] sm:$0xff]  ;;  %v181_v11 = vld [vmem:[%s1606_s0 + $0x548] sm:$0xff]  ;;  %v183_v12 = vld [vmem:[%s1606_s0 + $0x558] sm:$0xff] }
   0x5   :  { %223 = vmatpush1.msra.mxu0 %v194_v7  ;;  %294 = vmatpush1.msra.mxu1 %v196_v8  ;;  %v169_v13 = vld [vmem:[%s1606_s0 + $0x4e8] sm:$0xff]  ;;  %v171_v14 = vld [vmem:[%s1606_s0 + $0x4f8] sm:$0xff]  ;;  %v168_v15 = vld [vmem:[%s1606_s0 + $0x4e0] sm:$0xff] }
   0x6   :  { %224 = vmatprep.subr.mxu0 %v182_v9  ;;  %295 = vmatprep.subr.mxu1 %v184_v10  ;;  %v170_v16 = vld [vmem:[%s1606_s0 + $0x4f0] sm:$0xff]  ;;  %v156_v17 = vld [vmem:[%s1606_s0 + $0x480] sm:$0xff]  ;;  %v155_v19 = vld [vmem:[%s1606_s0 + $0x478] sm:$0xff] }
   0x7   :  { %225 = vmatpush1.msra.mxu0 %v181_v11  ;;  %296 = vmatpush1.msra.mxu1 %v183_v12  ;;  %v158_v18 = vld [vmem:[%s1606_s0 + $0x490] sm:$0xff]  ;;  %v157_v20 = vld [vmem:[%s1606_s0 + $0x488] sm:$0xff]  ;;  %v143_v21 = vld [vmem:[%s1606_s0 + $0x418] sm:$0xff] }
   0x8   :  { %226 = vmatprep.subr.mxu0 %v169_v13  ;;  %297 = vmatprep.subr.mxu1 %v171_v14  ;;  %v145_v22 = vld [vmem:[%s1606_s0 + $0x428] sm:$0xff]  ;;  %v142_v23 = vld [vmem:[%s1606_s0 + $0x410] sm:$0xff]  ;;  %v144_v24 = vld [vmem:[%s1606_s0 + $0x420] sm:$0xff] }
   0x9   :  { %227 = vmatpush1.msra.mxu0 %v168_v15  ;;  %298 = vmatpush1.msra.mxu1 %v170_v16  ;;  %v130_v25 = vld [vmem:[%s1606_s0 + $0x3b0] sm:$0xff]  ;;  %v132_v26 = vld [vmem:[%s1606_s0 + $0x3c0] sm:$0xff]  ;;  %v129_v27 = vld [vmem:[%s1606_s0 + $0x3a8] sm:$0xff] }
   0xa   :  { %228 = vmatprep.subr.mxu0 %v156_v17  ;;  %299 = vmatprep.subr.mxu1 %v158_v18  ;;  %v131_v28 = vld [vmem:[%s1606_s0 + $0x3b8] sm:$0xff]  ;;  %v117_v29 = vld [vmem:[%s1606_s0 + $0x348] sm:$0xff]  ;;  %v116_v31 = vld [vmem:[%s1606_s0 + $0x340] sm:$0xff] }
   0xb   :  { %229 = vmatpush1.msra.mxu0 %v155_v19  ;;  %300 = vmatpush1.msra.mxu1 %v157_v20  ;;  %v119_v30 = vld [vmem:[%s1606_s0 + $0x358] sm:$0xff]  ;;  %v118_v32 = vld [vmem:[%s1606_s0 + $0x350] sm:$0xff]  ;;  %v104_v33 = vld [vmem:[%s1606_s0 + $0x2e0] sm:$0xff] }
   0xc   :  { %230 = vmatprep.subr.mxu0 %v143_v21  ;;  %301 = vmatprep.subr.mxu1 %v145_v22  ;;  %v106_v34 = vld [vmem:[%s1606_s0 + $0x2f0] sm:$0xff]  ;;  %v103_v35 = vld [vmem:[%s1606_s0 + $0x2d8] sm:$0xff]  ;;  %v105_v36 = vld [vmem:[%s1606_s0 + $0x2e8] sm:$0xff] }
   0xd   :  { %231 = vmatpush1.msra.mxu0 %v142_v23  ;;  %302 = vmatpush1.msra.mxu1 %v144_v24  ;;  %v91_v37 = vld [vmem:[%s1606_s0 + $0x278] sm:$0xff]  ;;  %v93_v38 = vld [vmem:[%s1606_s0 + $0x288] sm:$0xff]  ;;  %v90_v39 = vld [vmem:[%s1606_s0 + $0x270] sm:$0xff] }
   0xe   :  { %232 = vmatprep.subr.mxu0 %v130_v25  ;;  %303 = vmatprep.subr.mxu1 %v132_v26  ;;  %v92_v40 = vld [vmem:[%s1606_s0 + $0x280] sm:$0xff]  ;;  %v78_v41 = vld [vmem:[%s1606_s0 + $0x210] sm:$0xff]  ;;  %v77_v43 = vld [vmem:[%s1606_s0 + $0x208] sm:$0xff] }
   0xf   :  { %233 = vmatpush1.msra.mxu0 %v129_v27  ;;  %304 = vmatpush1.msra.mxu1 %v131_v28  ;;  %v80_v42 = vld [vmem:[%s1606_s0 + $0x220] sm:$0xff]  ;;  %v79_v44 = vld [vmem:[%s1606_s0 + $0x218] sm:$0xff]  ;;  %v65_v45 = vld [vmem:[%s1606_s0 + $0x1a8] sm:$0xff] }
  0x10   :  { %234 = vmatprep.subr.mxu0 %v117_v29  ;;  %305 = vmatprep.subr.mxu1 %v119_v30  ;;  %v67_v46 = vld [vmem:[%s1606_s0 + $0x1b8] sm:$0xff]  ;;  %v64_v47 = vld [vmem:[%s1606_s0 + $0x1a0] sm:$0xff]  ;;  %v66_v48 = vld [vmem:[%s1606_s0 + $0x1b0] sm:$0xff] }
  0x11   :  { %235 = vmatpush1.msra.mxu0 %v116_v31  ;;  %306 = vmatpush1.msra.mxu1 %v118_v32  ;;  %v52_v49 = vld [vmem:[%s1606_s0 + $0x140] sm:$0xff]  ;;  %v54_v50 = vld [vmem:[%s1606_s0 + $0x150] sm:$0xff]  ;;  %v51_v51 = vld [vmem:[%s1606_s0 + $0x138] sm:$0xff] }
  0x12   :  { %236 = vmatprep.subr.mxu0 %v104_v33  ;;  %307 = vmatprep.subr.mxu1 %v106_v34  ;;  %v53_v52 = vld [vmem:[%s1606_s0 + $0x148] sm:$0xff]  ;;  %v39_v53 = vld [vmem:[%s1606_s0 + $0xd8] sm:$0xff]  ;;  %v38_v55 = vld [vmem:[%s1606_s0 + $0xd0] sm:$0xff] }
  0x13   :  { %237 = vmatpush1.msra.mxu0 %v103_v35  ;;  %308 = vmatpush1.msra.mxu1 %v105_v36  ;;  %v41_v54 = vld [vmem:[%s1606_s0 + $0xe8] sm:$0xff]  ;;  %v40_v56 = vld [vmem:[%s1606_s0 + $0xe0] sm:$0xff]  ;;  %v26_v57 = vld [vmem:[%s1606_s0 + $0x70] sm:$0xff] }
  0x14   :  { %238 = vmatprep.subr.mxu0 %v91_v37  ;;  %309 = vmatprep.subr.mxu1 %v93_v38  ;;  %v28_v58 = vld [vmem:[%s1606_s0 + $0x80] sm:$0xff]  ;;  %v25_v59 = vld [vmem:[%s1606_s0 + $0x68] sm:$0xff]  ;;  %v27_v60 = vld [vmem:[%s1606_s0 + $0x78] sm:$0xff] }
  0x15   :  { %239 = vmatpush1.msra.mxu0 %v90_v39  ;;  %310 = vmatpush1.msra.mxu1 %v92_v40  ;;  %v13_v61 = vld [vmem:[%s1606_s0 + $0x8] sm:$0xff]  ;;  %v15_v62 = vld [vmem:[%s1606_s0 + $0x18] sm:$0xff]  ;;  %v12_v63 = vld [vmem:[%s1606_s0] sm:$0xff] }
  0x16   :  { %240 = vmatprep.subr.mxu0 %v78_v41  ;;  %311 = vmatprep.subr.mxu1 %v80_v42  ;;  %v14_v0 = vld [vmem:[%s1606_s0 + $0x10] sm:$0xff]  ;;  %v1138_v1 = vld [vmem:[%s1607_s1] sm:$0x1]  ;;  %v211_v5 = vld [vmem:[%s1606_s0 + $0x638] sm:$0xff] }
  0x17   :  { %241 = vmatpush1.msra.mxu0 %v77_v43  ;;  %312 = vmatpush1.msra.mxu1 %v79_v44  ;;  %v212_v2 = vld [vmem:[%s1606_s0 + $0x640] sm:$0xff]  ;;  %v214_v4 = vld [vmem:[%s1606_s0 + $0x650] sm:$0xff]  ;;  %v213_v6 = vld [vmem:[%s1606_s0 + $0x648] sm:$0xff] }
  0x18   :  { %242 = vmatprep.subr.mxu0 %v65_v45  ;;  %313 = vmatprep.subr.mxu1 %v67_v46  ;;  %v199_v7 = vld [vmem:[%s1606_s0 + $0x5d8] sm:$0xff]  ;;  %v201_v8 = vld [vmem:[%s1606_s0 + $0x5e8] sm:$0xff]  ;;  %v198_v9 = vld [vmem:[%s1606_s0 + $0x5d0] sm:$0xff] }
  0x19   :  { %243 = vmatpush1.msra.mxu0 %v64_v47  ;;  %314 = vmatpush1.msra.mxu1 %v66_v48  ;;  %v200_v10 = vld [vmem:[%s1606_s0 + $0x5e0] sm:$0xff]  ;;  %v186_v11 = vld [vmem:[%s1606_s0 + $0x570] sm:$0xff]  ;;  %v185_v13 = vld [vmem:[%s1606_s0 + $0x568] sm:$0xff] }
  0x1a   :  { %244 = vmatprep.subr.mxu0 %v52_v49  ;;  %315 = vmatprep.subr.mxu1 %v54_v50  ;;  %v188_v12 = vld [vmem:[%s1606_s0 + $0x580] sm:$0xff]  ;;  %v187_v14 = vld [vmem:[%s1606_s0 + $0x578] sm:$0xff]  ;;  %v173_v15 = vld [vmem:[%s1606_s0 + $0x508] sm:$0xff] }
  0x1b   :  { %245 = vmatpush1.msra.mxu0 %v51_v51  ;;  %316 = vmatpush1.msra.mxu1 %v53_v52  ;;  %v175_v16 = vld [vmem:[%s1606_s0 + $0x518] sm:$0xff]  ;;  %v172_v17 = vld [vmem:[%s1606_s0 + $0x500] sm:$0xff]  ;;  %v174_v18 = vld [vmem:[%s1606_s0 + $0x510] sm:$0xff] }
  0x1c   :  { %246 = vmatprep.subr.mxu0 %v39_v53  ;;  %317 = vmatprep.subr.mxu1 %v41_v54  ;;  %v160_v19 = vld [vmem:[%s1606_s0 + $0x4a0] sm:$0xff]  ;;  %v162_v20 = vld [vmem:[%s1606_s0 + $0x4b0] sm:$0xff]  ;;  %v159_v21 = vld [vmem:[%s1606_s0 + $0x498] sm:$0xff] }
  0x1d   :  { %247 = vmatpush1.msra.mxu0 %v38_v55  ;;  %318 = vmatpush1.msra.mxu1 %v40_v56  ;;  %v161_v22 = vld [vmem:[%s1606_s0 + $0x4a8] sm:$0xff]  ;;  %v147_v23 = vld [vmem:[%s1606_s0 + $0x438] sm:$0xff]  ;;  %v146_v25 = vld [vmem:[%s1606_s0 + $0x430] sm:$0xff] }
  0x1e   :  { %248 = vmatprep.subr.mxu0 %v26_v57  ;;  %319 = vmatprep.subr.mxu1 %v28_v58  ;;  %v149_v24 = vld [vmem:[%s1606_s0 + $0x448] sm:$0xff]  ;;  %v148_v26 = vld [vmem:[%s1606_s0 + $0x440] sm:$0xff]  ;;  %v134_v27 = vld [vmem:[%s1606_s0 + $0x3d0] sm:$0xff] }
  0x1f   :  { %249 = vmatpush1.msra.mxu0 %v25_v59  ;;  %320 = vmatpush1.msra.mxu1 %v27_v60  ;;  %v136_v28 = vld [vmem:[%s1606_s0 + $0x3e0] sm:$0xff]  ;;  %v133_v29 = vld [vmem:[%s1606_s0 + $0x3c8] sm:$0xff]  ;;  %v135_v30 = vld [vmem:[%s1606_s0 + $0x3d8] sm:$0xff] }
  0x20   :  { %250 = vmatprep.subr.mxu0 %v13_v61  ;;  %321 = vmatprep.subr.mxu1 %v15_v62  ;;  %v121_v31 = vld [vmem:[%s1606_s0 + $0x368] sm:$0xff]  ;;  %v123_v32 = vld [vmem:[%s1606_s0 + $0x378] sm:$0xff]  ;;  %v120_v33 = vld [vmem:[%s1606_s0 + $0x360] sm:$0xff] }
  0x21   :  { %251 = vmatpush1.msra.mxu0 %v12_v63  ;;  %322 = vmatpush1.msra.mxu1 %v14_v0  ;;  %v122_v34 = vld [vmem:[%s1606_s0 + $0x370] sm:$0xff]  ;;  %v108_v35 = vld [vmem:[%s1606_s0 + $0x300] sm:$0xff]  ;;  %v107_v37 = vld [vmem:[%s1606_s0 + $0x2f8] sm:$0xff] }
  0x22   :  { %285 = vmatmul.mubr.f32.vlgmr.msra.gmra.mxu0 %v1138_v1  ;;  %356 = vmatmul.mubr.f32.vlgmr.msra.gmra.mxu1 %v1138_v1  ;;  %v110_v36 = vld [vmem:[%s1606_s0 + $0x310] sm:$0xff]  ;;  %v109_v38 = vld [vmem:[%s1606_s0 + $0x308] sm:$0xff]  ;;  %v95_v39 = vld [vmem:[%s1606_s0 + $0x298] sm:$0xff] }
  0x23   :  { %362 = vmatprep.subr.mxu0 %v212_v2  ;;  %433 = vmatprep.subr.mxu1 %v214_v4  ;;  %v97_v40 = vld [vmem:[%s1606_s0 + $0x2a8] sm:$0xff]  ;;  %v94_v41 = vld [vmem:[%s1606_s0 + $0x290] sm:$0xff]  ;;  %v96_v42 = vld [vmem:[%s1606_s0 + $0x2a0] sm:$0xff] }
  0x24   :  { %363 = vmatpush1.msra.mxu0 %v211_v5  ;;  %434 = vmatpush1.msra.mxu1 %v213_v6  ;;  %v82_v43 = vld [vmem:[%s1606_s0 + $0x230] sm:$0xff]  ;;  %v84_v44 = vld [vmem:[%s1606_s0 + $0x240] sm:$0xff]  ;;  %v81_v45 = vld [vmem:[%s1606_s0 + $0x228] sm:$0xff] }
  0x25   :  { %364 = vmatprep.subr.mxu0 %v199_v7  ;;  %435 = vmatprep.subr.mxu1 %v201_v8  ;;  %v83_v46 = vld [vmem:[%s1606_s0 + $0x238] sm:$0xff]  ;;  %v69_v47 = vld [vmem:[%s1606_s0 + $0x1c8] sm:$0xff]  ;;  %v68_v49 = vld [vmem:[%s1606_s0 + $0x1c0] sm:$0xff] }
  0x26   :  { %365 = vmatpush1.msra.mxu0 %v198_v9  ;;  %436 = vmatpush1.msra.mxu1 %v200_v10  ;;  %v71_v48 = vld [vmem:[%s1606_s0 + $0x1d8] sm:$0xff]  ;;  %v70_v50 = vld [vmem:[%s1606_s0 + $0x1d0] sm:$0xff]  ;;  %v56_v51 = vld [vmem:[%s1606_s0 + $0x160] sm:$0xff] }
  0x27   :  { %366 = vmatprep.subr.mxu0 %v186_v11  ;;  %437 = vmatprep.subr.mxu1 %v188_v12  ;;  %v58_v52 = vld [vmem:[%s1606_s0 + $0x170] sm:$0xff]  ;;  %v55_v53 = vld [vmem:[%s1606_s0 + $0x158] sm:$0xff]  ;;  %v57_v54 = vld [vmem:[%s1606_s0 + $0x168] sm:$0xff] }
  0x28   :  { %367 = vmatpush1.msra.mxu0 %v185_v13  ;;  %438 = vmatpush1.msra.mxu1 %v187_v14  ;;  %v43_v55 = vld [vmem:[%s1606_s0 + $0xf8] sm:$0xff]  ;;  %v45_v56 = vld [vmem:[%s1606_s0 + $0x108] sm:$0xff]  ;;  %v42_v57 = vld [vmem:[%s1606_s0 + $0xf0] sm:$0xff] }
  0x29   :  { %368 = vmatprep.subr.mxu0 %v173_v15  ;;  %439 = vmatprep.subr.mxu1 %v175_v16  ;;  %v44_v58 = vld [vmem:[%s1606_s0 + $0x100] sm:$0xff]  ;;  %v30_v59 = vld [vmem:[%s1606_s0 + $0x90] sm:$0xff]  ;;  %v29_v61 = vld [vmem:[%s1606_s0 + $0x88] sm:$0xff] }
  0x2a   :  { %369 = vmatpush1.msra.mxu0 %v172_v17  ;;  %440 = vmatpush1.msra.mxu1 %v174_v18  ;;  %v32_v60 = vld [vmem:[%s1606_s0 + $0xa0] sm:$0xff]  ;;  %v31_v62 = vld [vmem:[%s1606_s0 + $0x98] sm:$0xff]  ;;  %v17_v63 = vld [vmem:[%s1606_s0 + $0x28] sm:$0xff] }
  0x2b   :  { %370 = vmatprep.subr.mxu0 %v160_v19  ;;  %441 = vmatprep.subr.mxu1 %v162_v20  ;;  %v19_v0 = vld [vmem:[%s1606_s0 + $0x38] sm:$0xff]  ;;  %v16_v2 = vld [vmem:[%s1606_s0 + $0x20] sm:$0xff]  ;;  %v18_v4 = vld [vmem:[%s1606_s0 + $0x30] sm:$0xff] }
  0x2c   :  { %371 = vmatpush1.msra.mxu0 %v159_v21  ;;  %442 = vmatpush1.msra.mxu1 %v161_v22  ;;  %v216_v5 = vld [vmem:[%s1606_s0 + $0x660] sm:$0xff]  ;;  %v218_v6 = vld [vmem:[%s1606_s0 + $0x670] sm:$0xff]  ;;  %v215_v7 = vld [vmem:[%s1606_s0 + $0x658] sm:$0xff] }
  0x2d   :  { %372 = vmatprep.subr.mxu0 %v147_v23  ;;  %443 = vmatprep.subr.mxu1 %v149_v24  ;;  %v217_v8 = vld [vmem:[%s1606_s0 + $0x668] sm:$0xff]  ;;  %v203_v9 = vld [vmem:[%s1606_s0 + $0x5f8] sm:$0xff]  ;;  %v202_v11 = vld [vmem:[%s1606_s0 + $0x5f0] sm:$0xff] }
  0x2e   :  { %373 = vmatpush1.msra.mxu0 %v146_v25  ;;  %444 = vmatpush1.msra.mxu1 %v148_v26  ;;  %v205_v10 = vld [vmem:[%s1606_s0 + $0x608] sm:$0xff]  ;;  %v204_v12 = vld [vmem:[%s1606_s0 + $0x600] sm:$0xff]  ;;  %v190_v13 = vld [vmem:[%s1606_s0 + $0x590] sm:$0xff] }
  0x2f   :  { %374 = vmatprep.subr.mxu0 %v134_v27  ;;  %445 = vmatprep.subr.mxu1 %v136_v28  ;;  %v192_v14 = vld [vmem:[%s1606_s0 + $0x5a0] sm:$0xff]  ;;  %v189_v15 = vld [vmem:[%s1606_s0 + $0x588] sm:$0xff]  ;;  %v191_v16 = vld [vmem:[%s1606_s0 + $0x598] sm:$0xff] }
  0x30   :  { %375 = vmatpush1.msra.mxu0 %v133_v29  ;;  %446 = vmatpush1.msra.mxu1 %v135_v30  ;;  %v177_v17 = vld [vmem:[%s1606_s0 + $0x528] sm:$0xff]  ;;  %v179_v18 = vld [vmem:[%s1606_s0 + $0x538] sm:$0xff]  ;;  %v176_v19 = vld [vmem:[%s1606_s0 + $0x520] sm:$0xff] }
  0x31   :  { %376 = vmatprep.subr.mxu0 %v121_v31  ;;  %447 = vmatprep.subr.mxu1 %v123_v32  ;;  %v178_v20 = vld [vmem:[%s1606_s0 + $0x530] sm:$0xff]  ;;  %v164_v21 = vld [vmem:[%s1606_s0 + $0x4c0] sm:$0xff]  ;;  %v163_v23 = vld [vmem:[%s1606_s0 + $0x4b8] sm:$0xff] }
  0x32   :  { %377 = vmatpush1.msra.mxu0 %v120_v33  ;;  %448 = vmatpush1.msra.mxu1 %v122_v34  ;;  %v166_v22 = vld [vmem:[%s1606_s0 + $0x4d0] sm:$0xff]  ;;  %v165_v24 = vld [vmem:[%s1606_s0 + $0x4c8] sm:$0xff]  ;;  %v151_v25 = vld [vmem:[%s1606_s0 + $0x458] sm:$0xff] }
  0x33   :  { %378 = vmatprep.subr.mxu0 %v108_v35  ;;  %449 = vmatprep.subr.mxu1 %v110_v36  ;;  %v153_v26 = vld [vmem:[%s1606_s0 + $0x468] sm:$0xff]  ;;  %v150_v27 = vld [vmem:[%s1606_s0 + $0x450] sm:$0xff]  ;;  %v152_v28 = vld [vmem:[%s1606_s0 + $0x460] sm:$0xff] }
  0x34   :  { %379 = vmatpush1.msra.mxu0 %v107_v37  ;;  %450 = vmatpush1.msra.mxu1 %v109_v38  ;;  %v138_v29 = vld [vmem:[%s1606_s0 + $0x3f0] sm:$0xff]  ;;  %v140_v30 = vld [vmem:[%s1606_s0 + $0x400] sm:$0xff]  ;;  %v137_v31 = vld [vmem:[%s1606_s0 + $0x3e8] sm:$0xff] }
  0x35   :  { %380 = vmatprep.subr.mxu0 %v95_v39  ;;  %451 = vmatprep.subr.mxu1 %v97_v40  ;;  %v139_v32 = vld [vmem:[%s1606_s0 + $0x3f8] sm:$0xff]  ;;  %v125_v33 = vld [vmem:[%s1606_s0 + $0x388] sm:$0xff]  ;;  %v124_v35 = vld [vmem:[%s1606_s0 + $0x380] sm:$0xff] }
  0x36   :  { %381 = vmatpush1.msra.mxu0 %v94_v41  ;;  %452 = vmatpush1.msra.mxu1 %v96_v42  ;;  %v127_v34 = vld [vmem:[%s1606_s0 + $0x398] sm:$0xff]  ;;  %v126_v36 = vld [vmem:[%s1606_s0 + $0x390] sm:$0xff]  ;;  %v112_v37 = vld [vmem:[%s1606_s0 + $0x320] sm:$0xff] }
  0x37   :  { %382 = vmatprep.subr.mxu0 %v82_v43  ;;  %453 = vmatprep.subr.mxu1 %v84_v44  ;;  %v114_v38 = vld [vmem:[%s1606_s0 + $0x330] sm:$0xff]  ;;  %v111_v39 = vld [vmem:[%s1606_s0 + $0x318] sm:$0xff]  ;;  %v113_v40 = vld [vmem:[%s1606_s0 + $0x328] sm:$0xff] }
  0x38   :  { %383 = vmatpush1.msra.mxu0 %v81_v45  ;;  %454 = vmatpush1.msra.mxu1 %v83_v46  ;;  %v99_v41 = vld [vmem:[%s1606_s0 + $0x2b8] sm:$0xff]  ;;  %v101_v42 = vld [vmem:[%s1606_s0 + $0x2c8] sm:$0xff]  ;;  %v98_v43 = vld [vmem:[%s1606_s0 + $0x2b0] sm:$0xff] }
  0x39   :  { %384 = vmatprep.subr.mxu0 %v69_v47  ;;  %455 = vmatprep.subr.mxu1 %v71_v48  ;;  %v100_v44 = vld [vmem:[%s1606_s0 + $0x2c0] sm:$0xff]  ;;  %v86_v45 = vld [vmem:[%s1606_s0 + $0x250] sm:$0xff]  ;;  %v85_v47 = vld [vmem:[%s1606_s0 + $0x248] sm:$0xff] }
  0x3a   :  { %385 = vmatpush1.msra.mxu0 %v68_v49  ;;  %456 = vmatpush1.msra.mxu1 %v70_v50  ;;  %v88_v46 = vld [vmem:[%s1606_s0 + $0x260] sm:$0xff]  ;;  %v87_v48 = vld [vmem:[%s1606_s0 + $0x258] sm:$0xff]  ;;  %v73_v49 = vld [vmem:[%s1606_s0 + $0x1e8] sm:$0xff] }
  0x3b   :  { %386 = vmatprep.subr.mxu0 %v56_v51  ;;  %457 = vmatprep.subr.mxu1 %v58_v52  ;;  %v75_v50 = vld [vmem:[%s1606_s0 + $0x1f8] sm:$0xff]  ;;  %v72_v51 = vld [vmem:[%s1606_s0 + $0x1e0] sm:$0xff]  ;;  %v74_v52 = vld [vmem:[%s1606_s0 + $0x1f0] sm:$0xff] }
  0x3c   :  { %387 = vmatpush1.msra.mxu0 %v55_v53  ;;  %458 = vmatpush1.msra.mxu1 %v57_v54  ;;  %v60_v53 = vld [vmem:[%s1606_s0 + $0x180] sm:$0xff]  ;;  %v62_v54 = vld [vmem:[%s1606_s0 + $0x190] sm:$0xff] }
  0x3d   :  { %388 = vmatprep.subr.mxu0 %v43_v55  ;;  %459 = vmatprep.subr.mxu1 %v45_v56  ;;  %v59_v55 = vld [vmem:[%s1606_s0 + $0x178] sm:$0xff]  ;;  %v61_v56 = vld [vmem:[%s1606_s0 + $0x188] sm:$0xff] }
  0x3e   :  { %389 = vmatpush1.msra.mxu0 %v42_v57  ;;  %460 = vmatpush1.msra.mxu1 %v44_v58  ;;  %v47_v57 = vld [vmem:[%s1606_s0 + $0x118] sm:$0xff]  ;;  %v49_v58 = vld [vmem:[%s1606_s0 + $0x128] sm:$0xff] }
  0x3f   :  { %390 = vmatprep.subr.mxu0 %v30_v59  ;;  %461 = vmatprep.subr.mxu1 %v32_v60  ;;  %v46_v59 = vld [vmem:[%s1606_s0 + $0x110] sm:$0xff]  ;;  %v48_v60 = vld [vmem:[%s1606_s0 + $0x120] sm:$0xff] }
  0x40   :  { %391 = vmatpush1.msra.mxu0 %v29_v61  ;;  %462 = vmatpush1.msra.mxu1 %v31_v62  ;;  %v34_v61 = vld [vmem:[%s1606_s0 + $0xb0] sm:$0xff]  ;;  %v36_v62 = vld [vmem:[%s1606_s0 + $0xc0] sm:$0xff] }
  0x41   :  { %392 = vmatprep.subr.mxu0 %v17_v63  ;;  %463 = vmatprep.subr.mxu1 %v19_v0  ;;  %v33_v63 = vld [vmem:[%s1606_s0 + $0xa8] sm:$0xff]  ;;  %v35_v0 = vld [vmem:[%s1606_s0 + $0xb8] sm:$0xff] }
  0x42   :  { %393 = vmatpush1.msra.mxu0 %v16_v2  ;;  %426 = vmatprep.mubr.f32.mxu0 %v923_v3  ;;  %v21_v2 = vld [vmem:[%s1606_s0 + $0x48] sm:$0xff] }
  0x43   :  { %464 = vmatpush1.msra.mxu1 %v18_v4  ;;  %497 = vmatprep.mubr.f32.mxu1 %v923_v3  ;;  %v23_v4 = vld [vmem:[%s1606_s0 + $0x58] sm:$0xff] }
  0x44   :  { %427 = vmatmul.mubr.f32.vlgmr.msra.gmra.mxu0 %v1138_v1  ;;  %498 = vmatmul.mubr.f32.vlgmr.msra.gmra.mxu1 %v1138_v1 }
  0x45   :  { %504 = vmatprep.subr.mxu0 %v216_v5  ;;  %575 = vmatprep.subr.mxu1 %v218_v6  ;;  %v20_v5 = vld [vmem:[%s1606_s0 + $0x40] sm:$0xff]  ;;  %v22_v6 = vld [vmem:[%s1606_s0 + $0x50] sm:$0xff] }
  0x46   :  { %505 = vmatpush1.msra.mxu0 %v215_v7  ;;  %576 = vmatpush1.msra.mxu1 %v217_v8  ;;  %v219_v7 = vld [vmem:[%s1606_s0 + $0x678] sm:$0xff]  ;;  %v206_v8 = vld [vmem:[%s1606_s0 + $0x610] sm:$0xff] }
  0x47   :  { %506 = vmatprep.subr.mxu0 %v203_v9  ;;  %577 = vmatprep.subr.mxu1 %v205_v10  ;;  %v193_v9 = vld [vmem:[%s1606_s0 + $0x5a8] sm:$0xff]  ;;  %v180_v10 = vld [vmem:[%s1606_s0 + $0x540] sm:$0xff] }
  0x48   :  { %507 = vmatpush1.msra.mxu0 %v202_v11  ;;  %578 = vmatpush1.msra.mxu1 %v204_v12  ;;  %v167_v11 = vld [vmem:[%s1606_s0 + $0x4d8] sm:$0xff]  ;;  %v154_v12 = vld [vmem:[%s1606_s0 + $0x470] sm:$0xff] }
  0x49   :  { %508 = vmatprep.subr.mxu0 %v190_v13  ;;  %579 = vmatprep.subr.mxu1 %v192_v14  ;;  %v141_v13 = vld [vmem:[%s1606_s0 + $0x408] sm:$0xff]  ;;  %v128_v14 = vld [vmem:[%s1606_s0 + $0x3a0] sm:$0xff] }
  0x4a   :  { %509 = vmatpush1.msra.mxu0 %v189_v15  ;;  %580 = vmatpush1.msra.mxu1 %v191_v16  ;;  %v115_v15 = vld [vmem:[%s1606_s0 + $0x338] sm:$0xff]  ;;  %v102_v16 = vld [vmem:[%s1606_s0 + $0x2d0] sm:$0xff] }
  0x4b   :  { %510 = vmatprep.subr.mxu0 %v177_v17  ;;  %581 = vmatprep.subr.mxu1 %v179_v18  ;;  %v89_v17 = vld [vmem:[%s1606_s0 + $0x268] sm:$0xff]  ;;  %v76_v18 = vld [vmem:[%s1606_s0 + $0x200] sm:$0xff] }
  0x4c   :  { %511 = vmatpush1.msra.mxu0 %v176_v19  ;;  %582 = vmatpush1.msra.mxu1 %v178_v20  ;;  %v63_v19 = vld [vmem:[%s1606_s0 + $0x198] sm:$0xff]  ;;  %v50_v20 = vld [vmem:[%s1606_s0 + $0x130] sm:$0xff] }
  0x4d   :  { %512 = vmatprep.subr.mxu0 %v164_v21  ;;  %583 = vmatprep.subr.mxu1 %v166_v22  ;;  %v37_v21 = vld [vmem:[%s1606_s0 + $0xc8] sm:$0xff]  ;;  %v24_v22 = vld [vmem:[%s1606_s0 + $0x60] sm:$0xff] }
  0x4e   :  { %513 = vmatpush1.msra.mxu0 %v163_v23  ;;  %584 = vmatpush1.msra.mxu1 %v165_v24 }
  0x4f   :  { %514 = vmatprep.subr.mxu0 %v151_v25  ;;  %585 = vmatprep.subr.mxu1 %v153_v26 }
  0x50   :  { %515 = vmatpush1.msra.mxu0 %v150_v27  ;;  %586 = vmatpush1.msra.mxu1 %v152_v28 }
  0x51   :  { %516 = vmatprep.subr.mxu0 %v138_v29  ;;  %587 = vmatprep.subr.mxu1 %v140_v30 }
  0x52   :  { %517 = vmatpush1.msra.mxu0 %v137_v31  ;;  %588 = vmatpush1.msra.mxu1 %v139_v32  ;;  %v925_v31 = vmov 1966171168   ;;  %v749_v32 = vlaneseq }
  0x53   :  { %518 = vmatprep.subr.mxu0 %v125_v33  ;;  %589 = vmatprep.subr.mxu1 %v127_v34 }
  0x54   :  { %519 = vmatpush1.msra.mxu0 %v124_v35  ;;  %590 = vmatpush1.msra.mxu1 %v126_v36  ;;  %v750_v36 = vshrl.u32 %v749_v32, 7  ;;  %vm835_vm1 = vcmp.lt.s32.totalorder %v749_v32, 544 }
  0x55   :  { %520 = vmatprep.subr.mxu0 %v112_v37  ;;  %591 = vmatprep.subr.mxu1 %v114_v38 }
  0x56   :  { %521 = vmatpush1.msra.mxu0 %v111_v39  ;;  %592 = vmatpush1.msra.mxu1 %v113_v40 }
  0x57   :  { %522 = vmatprep.subr.mxu0 %v99_v41  ;;  %593 = vmatprep.subr.mxu1 %v101_v42 }
  0x58   :  { %523 = vmatpush1.msra.mxu0 %v98_v43  ;;  %594 = vmatpush1.msra.mxu1 %v100_v44 }
  0x59   :  { %524 = vmatprep.subr.mxu0 %v86_v45  ;;  %595 = vmatprep.subr.mxu1 %v88_v46 }
  0x5a   :  { %525 = vmatpush1.msra.mxu0 %v85_v47  ;;  %596 = vmatpush1.msra.mxu1 %v87_v48 }
  0x5b   :  { %526 = vmatprep.subr.mxu0 %v73_v49  ;;  %597 = vmatprep.subr.mxu1 %v75_v50 }
  0x5c   :  { %527 = vmatpush1.msra.mxu0 %v72_v51  ;;  %598 = vmatpush1.msra.mxu1 %v74_v52 }
  0x5d   :  { %528 = vmatprep.subr.mxu0 %v60_v53  ;;  %599 = vmatprep.subr.mxu1 %v62_v54 }
  0x5e   :  { %529 = vmatpush1.msra.mxu0 %v59_v55  ;;  %600 = vmatpush1.msra.mxu1 %v61_v56 }
  0x5f   :  { %530 = vmatprep.subr.mxu0 %v47_v57  ;;  %601 = vmatprep.subr.mxu1 %v49_v58 }
  0x60   :  { %531 = vmatpush1.msra.mxu0 %v46_v59  ;;  %602 = vmatpush1.msra.mxu1 %v48_v60 }
  0x61   :  { %532 = vmatprep.subr.mxu0 %v34_v61  ;;  %603 = vmatprep.subr.mxu1 %v36_v62 }
  0x62   :  { %533 = vmatpush1.msra.mxu0 %v33_v63  ;;  %604 = vmatpush1.msra.mxu1 %v35_v0 }
  0x63   :  { %534 = vmatprep.subr.mxu0 %v21_v2  ;;  %605 = vmatprep.subr.mxu1 %v23_v4 }
  0x64   :  { %535 = vmatpush1.msra.mxu0 %v20_v5  ;;  %568 = vmatprep.mubr.f32.mxu0 %v923_v3 }
  0x65   :  { %606 = vmatpush1.msra.mxu1 %v22_v6  ;;  %639 = vmatprep.mubr.f32.mxu1 %v923_v3 }
  0x66   :  { %569 = vmatmul.mubr.f32.vlgmr.msra.gmra.mxu0 %v1138_v1  ;;  %640 = vmatmul.mubr.f32.vlgmr.msra.gmra.mxu1 %v1138_v1 }
  0x67   :  { %859 = vmatprep.subr.mxu0 %v923_v3  ;;  %891 = vmatprep.mubr.msk.f32.mxu0 %vm924_vm0, %v923_v3 }
  0x68   :  { %860 = vmatpush3.msra.mxu0 %v219_v7 }
  0x69   :  { %861 = vmatprep.subr.mxu0 %v923_v3 }
  0x6a   :  { %862 = vmatpush3.msra.mxu0 %v206_v8 }
  0x6b   :  { %863 = vmatprep.subr.mxu0 %v923_v3 }
  0x6c   :  { %864 = vmatpush3.msra.mxu0 %v193_v9 }
  0x6d   :  { %865 = vmatprep.subr.mxu0 %v923_v3 }
  0x6e   :  { %866 = vmatpush3.msra.mxu0 %v180_v10 }
  0x6f   :  { %867 = vmatprep.subr.mxu0 %v923_v3 }
  0x70   :  { %868 = vmatpush3.msra.mxu0 %v167_v11 }
  0x71   :  { %869 = vmatprep.subr.mxu0 %v923_v3 }
  0x72   :  { %870 = vmatpush3.msra.mxu0 %v154_v12 }
  0x73   :  { %871 = vmatprep.subr.mxu0 %v923_v3 }
  0x74   :  { %872 = vmatpush3.msra.mxu0 %v141_v13 }
  0x75   :  { %873 = vmatprep.subr.mxu0 %v923_v3 }
  0x76   :  { %874 = vmatpush3.msra.mxu0 %v128_v14 }
  0x77   :  { %875 = vmatprep.subr.mxu0 %v923_v3 }
  0x78   :  { %876 = vmatpush3.msra.mxu0 %v115_v15 }
  0x79   :  { %877 = vmatprep.subr.mxu0 %v923_v3 }
  0x7a   :  { %878 = vmatpush3.msra.mxu0 %v102_v16 }
  0x7b   :  { %879 = vmatprep.subr.mxu0 %v923_v3 }
  0x7c   :  { %880 = vmatpush3.msra.mxu0 %v89_v17 }
  0x7d   :  { %881 = vmatprep.subr.mxu0 %v923_v3 }
  0x7e   :  { %882 = vmatpush3.msra.mxu0 %v76_v18 }
  0x7f   :  { %883 = vmatprep.subr.mxu0 %v923_v3 }
  0x80   :  { %884 = vmatpush3.msra.mxu0 %v63_v19 }
  0x81   :  { %885 = vmatprep.subr.mxu0 %v923_v3 }
  0x82   :  { %886 = vmatpush3.msra.mxu0 %v50_v20 }
  0x83   :  { %887 = vmatprep.subr.mxu0 %v923_v3 }
  0x84   :  { %888 = vmatpush3.msra.mxu0 %v37_v21 }
  0x85   :  { %889 = vmatprep.subr.mxu0 %v923_v3  ;;  %v747_v3 = vunpack.c.l.s4 %v925_v31 }
  0x86   :  { %890 = vmatpush3.msra.mxu0 %v24_v22 }
  0x87   :  { %892 = vmatmul.mubr.f32.vlgmr.msra.gmra.mxu0 %v1138_v1  ;;  %v748_v35 = vunpack.c.0.s8 %v747_v3 }
  0x89   :  { %v751_v39 = vsub.s32 %v748_v35, %v750_v36 }
  0xe2   :  { %v286_v23 = vpop.f32.mrf.mxu0  ;;  %v357_v24 = vpop.f32.mrf.mxu1 }
  0xe3   :  { %897 = vtanh.f32 %v286_v23 }
  0xe4   :  { %v288_v25 = vpop.f32.mrf.mxu0  ;;  %v359_v26 = vpop.f32.mrf.mxu1  ;;  %899 = vtanh.f32 %v357_v24 }
  0xe5   :  { %901 = vtanh.f32 %v288_v25 }
  0xe6   :  { %903 = vtanh.f32 %v359_v26 }
  0xf0   :  { %v898_v1 = vpop.eup %897 }
  0xf1   :  { %v900_v33 = vpop.eup %899 }
  0xf2   :  { %v902_v34 = vpop.eup %901 }
  0xf3   :  { %v904_v37 = vpop.eup %903  ;;  %v742_v38 = vcombine.low %v898_v1, %v902_v34 }
  0xf4   :  { %v743_v40 = vcombine.low %v900_v33, %v904_v37 }
  0xf5   :  { %v752_v44 = vrot.slane %v742_v38, %v751_v39 }
  0xf6   :  { %v759_v45 = vrot.slane %v743_v40, %v751_v39 }
  0xf8   :  { %v774_v50 = vcombine.low %v752_v44, %v759_v45 }
  0xfa   :  { %v782_v53 = vrot.slane %v774_v50, %v751_v39 }
 0x104   :  { %v428_v27 = vpop.f32.mrf.mxu0  ;;  %v499_v28 = vpop.f32.mrf.mxu1 }
 0x105   :  { %905 = vtanh.f32 %v428_v27 }
 0x106   :  { %907 = vtanh.f32 %v499_v28  ;;  %v430_v29 = vpop.f32.mrf.mxu0  ;;  %v501_v30 = vpop.f32.mrf.mxu1 }
 0x107   :  { %909 = vtanh.f32 %v430_v29 }
 0x108   :  { %911 = vtanh.f32 %v501_v30 }
 0x112   :  { %v906_v41 = vpop.eup %905 }
 0x113   :  { %v908_v42 = vpop.eup %907 }
 0x114   :  { %v910_v43 = vpop.eup %909 }
 0x115   :  { %v912_v46 = vpop.eup %911  ;;  %v744_v47 = vcombine.low %v906_v41, %v910_v43 }
 0x116   :  { %v745_v48 = vcombine.low %v908_v42, %v912_v46 }
 0x117   :  { %v766_v49 = vrot.slane %v744_v47, %v751_v39 }
 0x118   :  { %v773_v51 = vrot.slane %v745_v48, %v751_v39 }
 0x11a   :  { %v775_v52 = vcombine.low %v766_v49, %v773_v51 }
 0x11c   :  { %v789_v54 = vrot.slane %v775_v52, %v751_v39 }
 0x11e   :  { %v790_v55 = vcombine.low %v782_v53, %v789_v54 }
 0x120   :  { %832 = vst [vmem:[%s1608_s2] sm:$0xff] %v790_v55 }
 0x126   :  { %v570_v56 = vpop.f32.mrf.mxu0  ;;  %v641_v57 = vpop.f32.mrf.mxu1 }
 0x127   :  { %913 = vtanh.f32 %v570_v56 }
 0x128   :  { %v572_v58 = vpop.f32.mrf.mxu0  ;;  %v643_v59 = vpop.f32.mrf.mxu1  ;;  %915 = vtanh.f32 %v641_v57 }
 0x129   :  { %917 = vtanh.f32 %v572_v58 }
 0x12a   :  { %919 = vtanh.f32 %v643_v59 }
 0x134   :  { %v914_v60 = vpop.eup %913 }
 0x135   :  { %v916_v61 = vpop.eup %915 }
 0x136   :  { %v918_v63 = vpop.eup %917 }
 0x137   :  { %v920_v0 = vpop.eup %919  ;;  %v791_v4 = vcombine.low %v914_v60, %v918_v63 }
 0x138   :  { %v792_v5 = vcombine.low %v916_v61, %v920_v0 }
 0x139   :  { %v799_v6 = vrot.slane %v791_v4, %v751_v39 }
 0x13a   :  { %v806_v7 = vrot.slane %v792_v5, %v751_v39 }
 0x13c   :  { %v814_v8 = vcombine.low %v799_v6, %v806_v7 }
 0x13e   :  { %v821_v11 = vrot.slane %v814_v8, %v751_v39 }
 0x147   :  { %v712_v62 = vpop.f32.mrf.mxu0 }
 0x148   :  { %921 = vtanh.f32 %v712_v62 }
 0x149   :  { %v893_v2 = vpop.f32.mrf.mxu0 }
 0x155   :  { %v922_v9 = vpop.eup %921 }
 0x156   :  { %v813_v10 = vrot.slane %v922_v9, %v751_v39 }
 0x158   :  { %v828_v12 = vrot.slane %v813_v10, %v751_v39 }
 0x15a   :  { %v829_v13 = vcombine.low %v821_v11, %v828_v12 }
 0x15c   :  { %837 = vst.msk [vmem:[%s1608_s2 + $0x8] sm:$0x1f] %vm835_vm1, %v829_v13 }

</bundles_post_ra>
